<compile_context>
chip_gen: v7x
topology: tpu7x:2x2x1
jax: 0.10.0
libtpu: 0.0.40
codegen_flags: <defaults>
</compile_context>

<pallas_src>
import functools
import math

import jax
import jax.numpy as jnp
from jax.experimental import pallas as pl
from jax.experimental.pallas import tpu as pltpu

# TODO(synk): the LayerNormalizer source is not shown; PyTorch nn.LayerNorm
# defaults to eps=1e-5, transformer-tutorial LayerNormalizer usually uses 1e-6.
EPS = 1e-6


def _layer_norm(x, gamma, beta):
    mean = jnp.mean(x, axis=-1, keepdims=True)
    var = jnp.mean(jnp.square(x - mean), axis=-1, keepdims=True)
    return gamma * (x - mean) * jax.lax.rsqrt(var + EPS) + beta


# ---------------------------------------------------------------------------
# Fused encoder-stack kernel: grid = (batch, layer).
# ---------------------------------------------------------------------------
def encoder_stack_kernel(x_ref, bias_ref,
                         ln1_g_ref, ln1_b_ref,
                         wq_ref, bq_ref, wk_ref, bk_ref, wv_ref, bv_ref,
                         wo_ref, bo_ref,
                         ln2_g_ref, ln2_b_ref,
                         w1_ref, b1_ref, w2_ref, b2_ref,
                         fin_g_ref, fin_b_ref,
                         out_ref, h_ref,
                         *, num_heads, head_dim):
    layer = pl.program_id(1)
    num_layers = pl.num_programs(1)
    scale = 1.0 / math.sqrt(head_dim)

    # Seed the resident residual stream with the input at the first layer.
    @pl.when(layer == 0)
    def _():
        h_ref[...] = x_ref[0].astype(jnp.float32)

    x = h_ref[...]                      # (S, E) f32 residual stream
    mask_bias = bias_ref[...]           # (S, S) f32 additive bias (0 / -1e9)

    # ---------------- self-attention sublayer (pre-norm residual) -----------
    xn = _layer_norm(x, ln1_g_ref[0], ln1_b_ref[0])
    xn_b = xn.astype(jnp.bfloat16)      # bf16 operand for the MXU projections

    attn = jnp.zeros_like(x)            # f32 (S, E) accumulator over heads
    for h in range(num_heads):          # static unrolled; no activation slicing
        qh = jnp.dot(xn_b, wq_ref[0, h],
                     preferred_element_type=jnp.float32) + bq_ref[0, h]
        kh = jnp.dot(xn_b, wk_ref[0, h],
                     preferred_element_type=jnp.float32) + bk_ref[0, h]
        vh = jnp.dot(xn_b, wv_ref[0, h],
                     preferred_element_type=jnp.float32) + bv_ref[0, h]
        s = jnp.dot(qh, kh.T, preferred_element_type=jnp.float32) * scale
        s = s + mask_bias
        s = s - jnp.max(s, axis=-1, keepdims=True)
        p = jnp.exp(s)
        p = p * pl.reciprocal(jnp.sum(p, axis=-1, keepdims=True), approx=True)
        ctx = jnp.dot(p, vh, preferred_element_type=jnp.float32)        # (S, dh)
        # Per-head output projection accumulated directly -> no concat needed.
        attn = attn + jnp.dot(ctx.astype(jnp.bfloat16), wo_ref[0, h],
                              preferred_element_type=jnp.float32)
    h1 = x + attn + bo_ref[0]

    # ---------------- feed-forward sublayer (pre-norm residual) -------------
    hn = _layer_norm(h1, ln2_g_ref[0], ln2_b_ref[0])
    f = jnp.dot(hn.astype(jnp.bfloat16), w1_ref[0],
                preferred_element_type=jnp.float32) + b1_ref[0]
    f = jnp.maximum(f, 0.0)
    f = jnp.dot(f.astype(jnp.bfloat16), w2_ref[0],
                preferred_element_type=jnp.float32) + b2_ref[0]
    h2 = h1 + f

    h_ref[...] = h2                     # carry residual stream to next layer

    # Final LayerNorm folded into the last layer; single HBM writeback per batch.
    @pl.when(layer == num_layers - 1)
    def _():
        out_ref[0] = _layer_norm(h2, fin_g_ref[...],
                                 fin_b_ref[...]).astype(out_ref.dtype)


# ---------------------------------------------------------------------------
# Wrapper.
# ---------------------------------------------------------------------------
def encoder_forward(x, source_mask, prep, num_heads):
    B, S, E = x.shape
    L, H, _, dh = prep["wq"].shape
    F = prep["w1"].shape[-1]
    assert H == num_heads

    # Precompute additive mask bias once on the host side.
    mask_bias = jnp.where(source_mask == 0, -1e9, 0.0).astype(jnp.float32)

    def rep(shape):                         # constant across the whole grid
        nd = len(shape)
        return pl.BlockSpec(shape, lambda b, l, _n=nd: (0,) * _n)

    def per_layer(shape):                   # one layer slab per grid step
        nd = len(shape)
        return pl.BlockSpec((1,) + tuple(shape[1:]),
                            lambda b, l, _n=nd: (l,) + (0,) * (_n - 1))

    in_specs = [
        pl.BlockSpec((1, S, E), lambda b, l: (b, 0, 0)),   # x (read once per b)
        rep((S, S)),                                       # additive mask bias
        per_layer((L, 1, E)), per_layer((L, 1, E)),        # ln1 gamma/beta
        per_layer((L, H, E, dh)), per_layer((L, H, 1, dh)),  # Wq, bq
        per_layer((L, H, E, dh)), per_layer((L, H, 1, dh)),  # Wk, bk
        per_layer((L, H, E, dh)), per_layer((L, H, 1, dh)),  # Wv, bv
        per_layer((L, H, dh, E)), per_layer((L, 1, E)),      # Wo, bo
        per_layer((L, 1, E)), per_layer((L, 1, E)),          # ln2 gamma/beta
        per_layer((L, E, F)), per_layer((L, 1, F)),          # W1, b1
        per_layer((L, F, E)), per_layer((L, 1, E)),          # W2, b2
        rep((1, E)), rep((1, E)),                            # final gamma/beta
    ]

    kernel = functools.partial(encoder_stack_kernel, num_heads=H, head_dim=dh)
    return pl.pallas_call(
        kernel,
        out_shape=jax.ShapeDtypeStruct((B, S, E), jnp.float32),
        grid=(B, L),
        in_specs=in_specs,
        out_specs=pl.BlockSpec((1, S, E), lambda b, l: (b, 0, 0)),
        scratch_shapes=[pltpu.VMEM((S, E), jnp.float32)],   # resident residual
        compiler_params=pltpu.CompilerParams(
            dimension_semantics=("parallel", "arbitrary"),
            vmem_limit_bytes=48 * 1024 * 1024),
    )(x, mask_bias,
      prep["ln1_g"], prep["ln1_b"],
      prep["wq"], prep["bq"], prep["wk"], prep["bk"], prep["wv"], prep["bv"],
      prep["wo"], prep["bo"],
      prep["ln2_g"], prep["ln2_b"],
      prep["w1"], prep["b1"], prep["w2"], prep["b2"],
      prep["final_g"], prep["final_b"])


# ---------------------------------------------------------------------------
# Parameter init (nn.Linear / LayerNorm style) + kernel-layout preparation.
# ---------------------------------------------------------------------------
def init_params(key, num_encoders, embed, expansion):
    def linear(k, fan_in, shape):
        bound = 1.0 / math.sqrt(fan_in)
        return jax.random.uniform(k, shape, jnp.float32, -bound, bound)

    layers = []
    for i in range(num_encoders):
        ks = jax.random.split(jax.random.fold_in(key, i), 12)
        layers.append({
            "ln1_g": jnp.ones((1, embed), jnp.float32),
            "ln1_b": jnp.zeros((1, embed), jnp.float32),
            "wq": linear(ks[0], embed, (embed, embed)),
            "bq": linear(ks[1], embed, (1, embed)),
            "wk": linear(ks[2], embed, (embed, embed)),
            "bk": linear(ks[3], embed, (1, embed)),
            "wv": linear(ks[4], embed, (embed, embed)),
            "bv": linear(ks[5], embed, (1, embed)),
            "wo": linear(ks[6], embed, (embed, embed)),
            "bo": linear(ks[7], embed, (1, embed)),
            "ln2_g": jnp.ones((1, embed), jnp.float32),
            "ln2_b": jnp.zeros((1, embed), jnp.float32),
            "w1": linear(ks[8], embed, (embed, expansion)),
            "b1": linear(ks[9], embed, (1, expansion)),
            "w2": linear(ks[10], expansion, (expansion, embed)),
            "b2": linear(ks[11], expansion, (1, embed)),
        })
    return {
        "layers": layers,
        "final_g": jnp.ones((1, embed), jnp.float32),
        "final_b": jnp.zeros((1, embed), jnp.float32),
    }


def prepare_params(params, num_heads):
    """Stack per-layer params, split attention weights per head, cast to bf16."""
    layers = params["layers"]
    L = len(layers)
    E = layers[0]["wq"].shape[0]
    H = num_heads
    dh = E // H

    def stack(name):
        return jnp.stack([lp[name] for lp in layers], axis=0)

    def split_out(w):      # (L,E,E) -> (L,H,E,dh): per-head output columns
        return w.reshape(L, E, H, dh).transpose(0, 2, 1, 3)

    def split_bias(b):     # (L,1,E) -> (L,H,1,dh)
        return b.reshape(L, 1, H, dh).transpose(0, 2, 1, 3)

    return {
        "ln1_g": stack("ln1_g"), "ln1_b": stack("ln1_b"),
        "wq": split_out(stack("wq")).astype(jnp.bfloat16), "bq": split_bias(stack("bq")),
        "wk": split_out(stack("wk")).astype(jnp.bfloat16), "bk": split_bias(stack("bk")),
        "wv": split_out(stack("wv")).astype(jnp.bfloat16), "bv": split_bias(stack("bv")),
        "wo": stack("wo").reshape(L, H, dh, E).astype(jnp.bfloat16),  # per-head rows
        "bo": stack("bo"),
        "ln2_g": stack("ln2_g"), "ln2_b": stack("ln2_b"),
        "w1": stack("w1").astype(jnp.bfloat16), "b1": stack("b1"),
        "w2": stack("w2").astype(jnp.bfloat16), "b2": stack("b2"),
        "final_g": params["final_g"], "final_b": params["final_b"],
    }


# ---------------------------------------------------------------------------
# Pure-JAX reference with the same mixed precision (for a sanity check).
# ---------------------------------------------------------------------------
def _ref_encoder(x, source_mask, prep, num_heads):
    mask_bias = jnp.where(source_mask == 0, -1e9, 0.0).astype(jnp.float32)
    L, H, E, dh = prep["wq"].shape
    scale = 1.0 / math.sqrt(dh)

    h = x.astype(jnp.float32)
    for l in range(L):
        xn = _layer_norm(h, prep["ln1_g"][l], prep["ln1_b"][l])
        xn_b = xn.astype(jnp.bfloat16)
        attn = jnp.zeros_like(h)
        for hd in range(H):
            qh = jnp.einsum("bse,ed->bsd", xn_b, prep["wq"][l, hd],
                            preferred_element_type=jnp.float32) + prep["bq"][l, hd]
            kh = jnp.einsum("bse,ed->bsd", xn_b, prep["wk"][l, hd],
                            preferred_element_type=jnp.float32) + prep["bk"][l, hd]
            vh = jnp.einsum("bse,ed->bsd", xn_b, prep["wv"][l, hd],
                            preferred_element_type=jnp.float32) + prep["bv"][l, hd]
            s = jnp.einsum("bsd,btd->bst", qh, kh,
                           preferred_element_type=jnp.float32) * scale + mask_bias[None]
            p = jax.nn.softmax(s, axis=-1)
            ctx = jnp.einsum("bst,btd->bsd", p, vh, preferred_element_type=jnp.float32)
            attn = attn + jnp.einsum("bsd,de->bse", ctx.astype(jnp.bfloat16),
                                     prep["wo"][l, hd],
                                     preferred_element_type=jnp.float32)
        h1 = h + attn + prep["bo"][l]
        hn = _layer_norm(h1, prep["ln2_g"][l], prep["ln2_b"][l])
        f = jnp.einsum("bse,ef->bsf", hn.astype(jnp.bfloat16), prep["w1"][l],
                       preferred_element_type=jnp.float32) + prep["b1"][l]
        f = jnp.maximum(f, 0.0)
        f = jnp.einsum("bsf,fe->bse", f.astype(jnp.bfloat16), prep["w2"][l],
                       preferred_element_type=jnp.float32) + prep["b2"][l]
        h = h1 + f
    return _layer_norm(h, prep["final_g"], prep["final_b"])


if __name__ == "__main__":
    # Small deterministic example: batch=2, seq=8, embed=32, heads=8, expansion=64.
    B, S, E, H, F = 2, 8, 32, 8, 64
    num_encoders = 2

    key = jax.random.PRNGKey(0)
    k_x, k_p = jax.random.split(key)
    x = jax.random.normal(k_x, (B, S, E), jnp.float32)
    source_mask = jnp.ones((S, S), jnp.float32)   # no masking (all positions attend)

    params = init_params(k_p, num_encoders, E, F)
    prep = prepare_params(params, H)

    out = encoder_forward(x, source_mask, prep, H)
    out = jax.block_until_ready(out)

    ref = _ref_encoder(x, source_mask, prep, H)
    assert out.shape == (B, S, E)
    max_err = float(jnp.max(jnp.abs(out - ref)))
    assert jnp.allclose(out, ref, atol=2e-2, rtol=2e-2), (
        f"Pallas output mismatch vs JAX reference (max abs err {max_err})")

    print("KERNEL_OK")
</pallas_src>

<mosaic_0001>
module attributes {stable_mosaic.version = 11 : i64} {
  func.func @encoder_stack_kernel(%arg0: i32, %arg1: i32, %arg2: memref<1x8x32xf32, #tpu.memory_space<vmem>>, %arg3: memref<8x8xf32, #tpu.memory_space<vmem>>, %arg4: memref<1x1x32xf32, #tpu.memory_space<vmem>>, %arg5: memref<1x1x32xf32, #tpu.memory_space<vmem>>, %arg6: memref<1x8x32x4xbf16, #tpu.memory_space<vmem>>, %arg7: memref<1x8x1x4xf32, #tpu.memory_space<vmem>>, %arg8: memref<1x8x32x4xbf16, #tpu.memory_space<vmem>>, %arg9: memref<1x8x1x4xf32, #tpu.memory_space<vmem>>, %arg10: memref<1x8x32x4xbf16, #tpu.memory_space<vmem>>, %arg11: memref<1x8x1x4xf32, #tpu.memory_space<vmem>>, %arg12: memref<1x8x4x32xbf16, #tpu.memory_space<vmem>>, %arg13: memref<1x1x32xf32, #tpu.memory_space<vmem>>, %arg14: memref<1x1x32xf32, #tpu.memory_space<vmem>>, %arg15: memref<1x1x32xf32, #tpu.memory_space<vmem>>, %arg16: memref<1x32x64xbf16, #tpu.memory_space<vmem>>, %arg17: memref<1x1x64xf32, #tpu.memory_space<vmem>>, %arg18: memref<1x64x32xbf16, #tpu.memory_space<vmem>>, %arg19: memref<1x1x32xf32, #tpu.memory_space<vmem>>, %arg20: memref<1x32xf32, #tpu.memory_space<vmem>>, %arg21: memref<1x32xf32, #tpu.memory_space<vmem>>, %arg22: memref<1x8x32xf32, #tpu.memory_space<vmem>>, %arg23: memref<8x32xf32, #tpu.memory_space<vmem>>) attributes {dimension_semantics = [#tpu.dimension_semantics<parallel>, #tpu.dimension_semantics<arbitrary>], iteration_bounds = array<i64: 2, 2>, scalar_prefetch = 0 : i64, scratch_operands = 1 : i64, tpu.core_type = #tpu.core_type<tc>, window_params = [{transform_indices = @transform_0, window_bounds = array<i64: 1, 8, 32>}, {pipeline_mode = #tpu.pipeline_mode<synchronous>, transform_indices = @transform_1, window_bounds = array<i64: 8, 8>}, {transform_indices = @transform_2, window_bounds = array<i64: 1, 1, 32>}, {transform_indices = @transform_3, window_bounds = array<i64: 1, 1, 32>}, {transform_indices = @transform_4, window_bounds = array<i64: 1, 8, 32, 4>}, {transform_indices = @transform_5, window_bounds = array<i64: 1, 8, 1, 4>}, {transform_indices = @transform_6, window_bounds = array<i64: 1, 8, 32, 4>}, {transform_indices = @transform_7, window_bounds = array<i64: 1, 8, 1, 4>}, {transform_indices = @transform_8, window_bounds = array<i64: 1, 8, 32, 4>}, {transform_indices = @transform_9, window_bounds = array<i64: 1, 8, 1, 4>}, {transform_indices = @transform_10, window_bounds = array<i64: 1, 8, 4, 32>}, {transform_indices = @transform_11, window_bounds = array<i64: 1, 1, 32>}, {transform_indices = @transform_12, window_bounds = array<i64: 1, 1, 32>}, {transform_indices = @transform_13, window_bounds = array<i64: 1, 1, 32>}, {transform_indices = @transform_14, window_bounds = array<i64: 1, 32, 64>}, {transform_indices = @transform_15, window_bounds = array<i64: 1, 1, 64>}, {transform_indices = @transform_16, window_bounds = array<i64: 1, 64, 32>}, {transform_indices = @transform_17, window_bounds = array<i64: 1, 1, 32>}, {pipeline_mode = #tpu.pipeline_mode<synchronous>, transform_indices = @transform_18, window_bounds = array<i64: 1, 32>}, {pipeline_mode = #tpu.pipeline_mode<synchronous>, transform_indices = @transform_19, window_bounds = array<i64: 1, 32>}, {transform_indices = @transform_20, window_bounds = array<i64: 1, 8, 32>}]} {
    %c0_i32 = arith.constant 0 : i32
    %0 = arith.cmpi eq, %arg1, %c0_i32 : i32
    %1 = arith.extui %0 : i1 to i32
    %c0_i32_0 = arith.constant 0 : i32
    %2 = arith.cmpi ne, %1, %c0_i32_0 : i32
    scf.if %2 {
      %c0_336 = arith.constant 0 : index
      %c0_337 = arith.constant 0 : index
      %c0_338 = arith.constant 0 : index
      %423 = vector.load %arg2[%c0_336, %c0_337, %c0_338] : memref<1x8x32xf32, #tpu.memory_space<vmem>>, vector<1x8x32xf32>
      %424 = vector.shape_cast %423 : vector<1x8x32xf32> to vector<8x32xf32>
      %c0_339 = arith.constant 0 : index
      %c0_340 = arith.constant 0 : index
      %425 = vector.load %arg23[%c0_339, %c0_340] : memref<8x32xf32, #tpu.memory_space<vmem>>, vector<8x32xf32>
      tpu.vector_store %arg23[%c0_339, %c0_340], %424 {strides = array<i32>} : memref<8x32xf32, #tpu.memory_space<vmem>>, vector<8x32xf32>,
    } else {
    }
    %c0 = arith.constant 0 : index
    %c0_1 = arith.constant 0 : index
    %3 = vector.load %arg23[%c0, %c0_1] : memref<8x32xf32, #tpu.memory_space<vmem>>, vector<8x32xf32>
    %c0_2 = arith.constant 0 : index
    %c0_3 = arith.constant 0 : index
    %4 = vector.load %arg3[%c0_2, %c0_3] : memref<8x8xf32, #tpu.memory_space<vmem>>, vector<8x8xf32>
    %c0_4 = arith.constant 0 : index
    %c0_5 = arith.constant 0 : index
    %c0_6 = arith.constant 0 : index
    %5 = vector.load %arg4[%c0_4, %c0_5, %c0_6] : memref<1x1x32xf32, #tpu.memory_space<vmem>>, vector<1x1x32xf32>
    %6 = vector.shape_cast %5 : vector<1x1x32xf32> to vector<1x32xf32>
    %c0_7 = arith.constant 0 : index
    %c0_8 = arith.constant 0 : index
    %c0_9 = arith.constant 0 : index
    %7 = vector.load %arg5[%c0_7, %c0_8, %c0_9] : memref<1x1x32xf32, #tpu.memory_space<vmem>>, vector<1x1x32xf32>
    %8 = vector.shape_cast %7 : vector<1x1x32xf32> to vector<1x32xf32>
    %cst = arith.constant dense<0.000000e+00> : vector<8xf32>
    %9 = vector.multi_reduction <add>, %3, %cst [1] : vector<8x32xf32> to vector<8xf32>
    %10 = vector.shape_cast %9 : vector<8xf32> to vector<8x1xf32>
    %cst_10 = arith.constant 3.200000e+01 : f32
    %11 = vector.broadcast %cst_10 : f32 to vector<8x1xf32>
    %12 = arith.divf %10, %11 : vector<8x1xf32>
    %13 = vector.broadcast %12 : vector<8x1xf32> to vector<8x32xf32>
    %14 = arith.subf %3, %13 : vector<8x32xf32>
    %15 = arith.mulf %14, %14 : vector<8x32xf32>
    %cst_11 = arith.constant dense<0.000000e+00> : vector<8xf32>
    %16 = vector.multi_reduction <add>, %15, %cst_11 [1] : vector<8x32xf32> to vector<8xf32>
    %17 = vector.shape_cast %16 : vector<8xf32> to vector<8x1xf32>
    %cst_12 = arith.constant 3.200000e+01 : f32
    %18 = vector.broadcast %cst_12 : f32 to vector<8x1xf32>
    %19 = arith.divf %17, %18 : vector<8x1xf32>
    %20 = vector.broadcast %12 : vector<8x1xf32> to vector<8x32xf32>
    %21 = arith.subf %3, %20 : vector<8x32xf32>
    %22 = vector.broadcast %6 : vector<1x32xf32> to vector<8x32xf32>
    %23 = arith.mulf %22, %21 : vector<8x32xf32>
    %cst_13 = arith.constant 9.99999997E-7 : f32
    %24 = vector.broadcast %cst_13 : f32 to vector<8x1xf32>
    %25 = arith.addf %19, %24 : vector<8x1xf32>
    %26 = math.rsqrt %25 : vector<8x1xf32>
    %27 = vector.broadcast %26 : vector<8x1xf32> to vector<8x32xf32>
    %28 = arith.mulf %23, %27 : vector<8x32xf32>
    %29 = vector.broadcast %8 : vector<1x32xf32> to vector<8x32xf32>
    %30 = arith.addf %28, %29 : vector<8x32xf32>
    %31 = arith.truncf %30 : vector<8x32xf32> to vector<8x32xbf16>
    %cst_14 = arith.constant 0.000000e+00 : f32
    %32 = vector.broadcast %cst_14 : f32 to vector<8x32xf32>
    %c0_15 = arith.constant 0 : index
    %c0_16 = arith.constant 0 : index
    %c0_17 = arith.constant 0 : index
    %c0_18 = arith.constant 0 : index
    %33 = vector.load %arg6[%c0_15, %c0_16, %c0_17, %c0_18] : memref<1x8x32x4xbf16, #tpu.memory_space<vmem>>, vector<1x1x32x4xbf16>
    %34 = vector.shape_cast %33 : vector<1x1x32x4xbf16> to vector<32x4xbf16>
    %cst_19 = arith.constant dense<0.000000e+00> : vector<8x4xf32>
    %35 = tpu.matmul %31, %34, %cst_19 {dimension_numbers = #tpu.dot_dimension_numbers<[1], [0], [0], [1], [0, 0, 1, 1], [], []>} : vector<8x32xbf16>, vector<32x4xbf16>, vector<8x4xf32> -> vector<8x4xf32>
    %c0_20 = arith.constant 0 : index
    %c0_21 = arith.constant 0 : index
    %c0_22 = arith.constant 0 : index
    %c0_23 = arith.constant 0 : index
    %36 = vector.load %arg7[%c0_20, %c0_21, %c0_22, %c0_23] : memref<1x8x1x4xf32, #tpu.memory_space<vmem>>, vector<1x1x1x4xf32>
    %37 = vector.shape_cast %36 : vector<1x1x1x4xf32> to vector<1x4xf32>
    %38 = vector.broadcast %37 : vector<1x4xf32> to vector<8x4xf32>
    %39 = arith.addf %35, %38 : vector<8x4xf32>
    %c0_24 = arith.constant 0 : index
    %c0_25 = arith.constant 0 : index
    %c0_26 = arith.constant 0 : index
    %c0_27 = arith.constant 0 : index
    %40 = vector.load %arg8[%c0_24, %c0_25, %c0_26, %c0_27] : memref<1x8x32x4xbf16, #tpu.memory_space<vmem>>, vector<1x1x32x4xbf16>
    %41 = vector.shape_cast %40 : vector<1x1x32x4xbf16> to vector<32x4xbf16>
    %cst_28 = arith.constant dense<0.000000e+00> : vector<8x4xf32>
    %42 = tpu.matmul %31, %41, %cst_28 {dimension_numbers = #tpu.dot_dimension_numbers<[1], [0], [0], [1], [0, 0, 1, 1], [], []>} : vector<8x32xbf16>, vector<32x4xbf16>, vector<8x4xf32> -> vector<8x4xf32>
    %c0_29 = arith.constant 0 : index
    %c0_30 = arith.constant 0 : index
    %c0_31 = arith.constant 0 : index
    %c0_32 = arith.constant 0 : index
    %43 = vector.load %arg9[%c0_29, %c0_30, %c0_31, %c0_32] : memref<1x8x1x4xf32, #tpu.memory_space<vmem>>, vector<1x1x1x4xf32>
    %44 = vector.shape_cast %43 : vector<1x1x1x4xf32> to vector<1x4xf32>
    %45 = vector.broadcast %44 : vector<1x4xf32> to vector<8x4xf32>
    %46 = arith.addf %42, %45 : vector<8x4xf32>
    %c0_33 = arith.constant 0 : index
    %c0_34 = arith.constant 0 : index
    %c0_35 = arith.constant 0 : index
    %c0_36 = arith.constant 0 : index
    %47 = vector.load %arg10[%c0_33, %c0_34, %c0_35, %c0_36] : memref<1x8x32x4xbf16, #tpu.memory_space<vmem>>, vector<1x1x32x4xbf16>
    %48 = vector.shape_cast %47 : vector<1x1x32x4xbf16> to vector<32x4xbf16>
    %cst_37 = arith.constant dense<0.000000e+00> : vector<8x4xf32>
    %49 = tpu.matmul %31, %48, %cst_37 {dimension_numbers = #tpu.dot_dimension_numbers<[1], [0], [0], [1], [0, 0, 1, 1], [], []>} : vector<8x32xbf16>, vector<32x4xbf16>, vector<8x4xf32> -> vector<8x4xf32>
    %c0_38 = arith.constant 0 : index
    %c0_39 = arith.constant 0 : index
    %c0_40 = arith.constant 0 : index
    %c0_41 = arith.constant 0 : index
    %50 = vector.load %arg11[%c0_38, %c0_39, %c0_40, %c0_41] : memref<1x8x1x4xf32, #tpu.memory_space<vmem>>, vector<1x1x1x4xf32>
    %51 = vector.shape_cast %50 : vector<1x1x1x4xf32> to vector<1x4xf32>
    %52 = vector.broadcast %51 : vector<1x4xf32> to vector<8x4xf32>
    %53 = arith.addf %49, %52 : vector<8x4xf32>
    %54 = tpu.transpose %46, [1, 0] : vector<8x4xf32> -> vector<4x8xf32>
    %cst_42 = arith.constant dense<0.000000e+00> : vector<8x8xf32>
    %55 = tpu.matmul %39, %54, %cst_42 {dimension_numbers = #tpu.dot_dimension_numbers<[1], [0], [0], [1], [0, 0, 1, 1], [], []>} : vector<8x4xf32>, vector<4x8xf32>, vector<8x8xf32> -> vector<8x8xf32>
    %cst_43 = arith.constant 5.000000e-01 : f32
    %56 = vector.broadcast %cst_43 : f32 to vector<8x8xf32>
    %57 = arith.mulf %55, %56 : vector<8x8xf32>
    %58 = arith.addf %57, %4 : vector<8x8xf32>
    %cst_44 = arith.constant dense<0xFF800000> : vector<8xf32>
    %59 = vector.multi_reduction <maximumf>, %58, %cst_44 [1] : vector<8x8xf32> to vector<8xf32>
    %60 = vector.shape_cast %59 : vector<8xf32> to vector<8x1xf32>
    %61 = vector.broadcast %60 : vector<8x1xf32> to vector<8x8xf32>
    %62 = arith.subf %58, %61 : vector<8x8xf32>
    %63 = math.exp %62 : vector<8x8xf32>
    %cst_45 = arith.constant dense<0.000000e+00> : vector<8xf32>
    %64 = vector.multi_reduction <add>, %63, %cst_45 [1] : vector<8x8xf32> to vector<8xf32>
    %65 = vector.shape_cast %64 : vector<8xf32> to vector<8x1xf32>
    %66 = tpu.reciprocal %65 {approx = true} : vector<8x1xf32> -> vector<8x1xf32>
    %67 = vector.broadcast %66 : vector<8x1xf32> to vector<8x8xf32>
    %68 = arith.mulf %63, %67 : vector<8x8xf32>
    %cst_46 = arith.constant dense<0.000000e+00> : vector<8x4xf32>
    %69 = tpu.matmul %68, %53, %cst_46 {dimension_numbers = #tpu.dot_dimension_numbers<[1], [0], [0], [1], [0, 0, 1, 1], [], []>} : vector<8x8xf32>, vector<8x4xf32>, vector<8x4xf32> -> vector<8x4xf32>
    %70 = arith.truncf %69 : vector<8x4xf32> to vector<8x4xbf16>
    %c0_47 = arith.constant 0 : index
    %c0_48 = arith.constant 0 : index
    %c0_49 = arith.constant 0 : index
    %c0_50 = arith.constant 0 : index
    %71 = vector.load %arg12[%c0_47, %c0_48, %c0_49, %c0_50] : memref<1x8x4x32xbf16, #tpu.memory_space<vmem>>, vector<1x1x4x32xbf16>
    %72 = vector.shape_cast %71 : vector<1x1x4x32xbf16> to vector<4x32xbf16>
    %cst_51 = arith.constant dense<0.000000e+00> : vector<8x32xf32>
    %73 = tpu.matmul %70, %72, %cst_51 {dimension_numbers = #tpu.dot_dimension_numbers<[1], [0], [0], [1], [0, 0, 1, 1], [], []>} : vector<8x4xbf16>, vector<4x32xbf16>, vector<8x32xf32> -> vector<8x32xf32>
    %74 = arith.addf %32, %73 : vector<8x32xf32>
    %c0_52 = arith.constant 0 : index
    %c1 = arith.constant 1 : index
    %c0_53 = arith.constant 0 : index
    %c0_54 = arith.constant 0 : index
    %75 = vector.load %arg6[%c0_52, %c1, %c0_53, %c0_54] : memref<1x8x32x4xbf16, #tpu.memory_space<vmem>>, vector<1x1x32x4xbf16>
    %76 = vector.shape_cast %75 : vector<1x1x32x4xbf16> to vector<32x4xbf16>
    %cst_55 = arith.constant dense<0.000000e+00> : vector<8x4xf32>
    %77 = tpu.matmul %31, %76, %cst_55 {dimension_numbers = #tpu.dot_dimension_numbers<[1], [0], [0], [1], [0, 0, 1, 1], [], []>} : vector<8x32xbf16>, vector<32x4xbf16>, vector<8x4xf32> -> vector<8x4xf32>
    %c0_56 = arith.constant 0 : index
    %c1_57 = arith.constant 1 : index
    %c0_58 = arith.constant 0 : index
    %c0_59 = arith.constant 0 : index
    %78 = vector.load %arg7[%c0_56, %c1_57, %c0_58, %c0_59] : memref<1x8x1x4xf32, #tpu.memory_space<vmem>>, vector<1x1x1x4xf32>
    %79 = vector.shape_cast %78 : vector<1x1x1x4xf32> to vector<1x4xf32>
    %80 = vector.broadcast %79 : vector<1x4xf32> to vector<8x4xf32>
    %81 = arith.addf %77, %80 : vector<8x4xf32>
    %c0_60 = arith.constant 0 : index
    %c1_61 = arith.constant 1 : index
    %c0_62 = arith.constant 0 : index
    %c0_63 = arith.constant 0 : index
    %82 = vector.load %arg8[%c0_60, %c1_61, %c0_62, %c0_63] : memref<1x8x32x4xbf16, #tpu.memory_space<vmem>>, vector<1x1x32x4xbf16>
    %83 = vector.shape_cast %82 : vector<1x1x32x4xbf16> to vector<32x4xbf16>
    %cst_64 = arith.constant dense<0.000000e+00> : vector<8x4xf32>
    %84 = tpu.matmul %31, %83, %cst_64 {dimension_numbers = #tpu.dot_dimension_numbers<[1], [0], [0], [1], [0, 0, 1, 1], [], []>} : vector<8x32xbf16>, vector<32x4xbf16>, vector<8x4xf32> -> vector<8x4xf32>
    %c0_65 = arith.constant 0 : index
    %c1_66 = arith.constant 1 : index
    %c0_67 = arith.constant 0 : index
    %c0_68 = arith.constant 0 : index
    %85 = vector.load %arg9[%c0_65, %c1_66, %c0_67, %c0_68] : memref<1x8x1x4xf32, #tpu.memory_space<vmem>>, vector<1x1x1x4xf32>
    %86 = vector.shape_cast %85 : vector<1x1x1x4xf32> to vector<1x4xf32>
    %87 = vector.broadcast %86 : vector<1x4xf32> to vector<8x4xf32>
    %88 = arith.addf %84, %87 : vector<8x4xf32>
    %c0_69 = arith.constant 0 : index
    %c1_70 = arith.constant 1 : index
    %c0_71 = arith.constant 0 : index
    %c0_72 = arith.constant 0 : index
    %89 = vector.load %arg10[%c0_69, %c1_70, %c0_71, %c0_72] : memref<1x8x32x4xbf16, #tpu.memory_space<vmem>>, vector<1x1x32x4xbf16>
    %90 = vector.shape_cast %89 : vector<1x1x32x4xbf16> to vector<32x4xbf16>
    %cst_73 = arith.constant dense<0.000000e+00> : vector<8x4xf32>
    %91 = tpu.matmul %31, %90, %cst_73 {dimension_numbers = #tpu.dot_dimension_numbers<[1], [0], [0], [1], [0, 0, 1, 1], [], []>} : vector<8x32xbf16>, vector<32x4xbf16>, vector<8x4xf32> -> vector<8x4xf32>
    %c0_74 = arith.constant 0 : index
    %c1_75 = arith.constant 1 : index
    %c0_76 = arith.constant 0 : index
    %c0_77 = arith.constant 0 : index
    %92 = vector.load %arg11[%c0_74, %c1_75, %c0_76, %c0_77] : memref<1x8x1x4xf32, #tpu.memory_space<vmem>>, vector<1x1x1x4xf32>
    %93 = vector.shape_cast %92 : vector<1x1x1x4xf32> to vector<1x4xf32>
    %94 = vector.broadcast %93 : vector<1x4xf32> to vector<8x4xf32>
    %95 = arith.addf %91, %94 : vector<8x4xf32>
    %96 = tpu.transpose %88, [1, 0] : vector<8x4xf32> -> vector<4x8xf32>
    %cst_78 = arith.constant dense<0.000000e+00> : vector<8x8xf32>
    %97 = tpu.matmul %81, %96, %cst_78 {dimension_numbers = #tpu.dot_dimension_numbers<[1], [0], [0], [1], [0, 0, 1, 1], [], []>} : vector<8x4xf32>, vector<4x8xf32>, vector<8x8xf32> -> vector<8x8xf32>
    %cst_79 = arith.constant 5.000000e-01 : f32
    %98 = vector.broadcast %cst_79 : f32 to vector<8x8xf32>
    %99 = arith.mulf %97, %98 : vector<8x8xf32>
    %100 = arith.addf %99, %4 : vector<8x8xf32>
    %cst_80 = arith.constant dense<0xFF800000> : vector<8xf32>
    %101 = vector.multi_reduction <maximumf>, %100, %cst_80 [1] : vector<8x8xf32> to vector<8xf32>
    %102 = vector.shape_cast %101 : vector<8xf32> to vector<8x1xf32>
    %103 = vector.broadcast %102 : vector<8x1xf32> to vector<8x8xf32>
    %104 = arith.subf %100, %103 : vector<8x8xf32>
    %105 = math.exp %104 : vector<8x8xf32>
    %cst_81 = arith.constant dense<0.000000e+00> : vector<8xf32>
    %106 = vector.multi_reduction <add>, %105, %cst_81 [1] : vector<8x8xf32> to vector<8xf32>
    %107 = vector.shape_cast %106 : vector<8xf32> to vector<8x1xf32>
    %108 = tpu.reciprocal %107 {approx = true} : vector<8x1xf32> -> vector<8x1xf32>
    %109 = vector.broadcast %108 : vector<8x1xf32> to vector<8x8xf32>
    %110 = arith.mulf %105, %109 : vector<8x8xf32>
    %cst_82 = arith.constant dense<0.000000e+00> : vector<8x4xf32>
    %111 = tpu.matmul %110, %95, %cst_82 {dimension_numbers = #tpu.dot_dimension_numbers<[1], [0], [0], [1], [0, 0, 1, 1], [], []>} : vector<8x8xf32>, vector<8x4xf32>, vector<8x4xf32> -> vector<8x4xf32>
    %112 = arith.truncf %111 : vector<8x4xf32> to vector<8x4xbf16>
    %c0_83 = arith.constant 0 : index
    %c1_84 = arith.constant 1 : index
    %c0_85 = arith.constant 0 : index
    %c0_86 = arith.constant 0 : index
    %113 = vector.load %arg12[%c0_83, %c1_84, %c0_85, %c0_86] : memref<1x8x4x32xbf16, #tpu.memory_space<vmem>>, vector<1x1x4x32xbf16>
    %114 = vector.shape_cast %113 : vector<1x1x4x32xbf16> to vector<4x32xbf16>
    %cst_87 = arith.constant dense<0.000000e+00> : vector<8x32xf32>
    %115 = tpu.matmul %112, %114, %cst_87 {dimension_numbers = #tpu.dot_dimension_numbers<[1], [0], [0], [1], [0, 0, 1, 1], [], []>} : vector<8x4xbf16>, vector<4x32xbf16>, vector<8x32xf32> -> vector<8x32xf32>
    %116 = arith.addf %74, %115 : vector<8x32xf32>
    %c0_88 = arith.constant 0 : index
    %c2 = arith.constant 2 : index
    %c0_89 = arith.constant 0 : index
    %c0_90 = arith.constant 0 : index
    %117 = vector.load %arg6[%c0_88, %c2, %c0_89, %c0_90] : memref<1x8x32x4xbf16, #tpu.memory_space<vmem>>, vector<1x1x32x4xbf16>
    %118 = vector.shape_cast %117 : vector<1x1x32x4xbf16> to vector<32x4xbf16>
    %cst_91 = arith.constant dense<0.000000e+00> : vector<8x4xf32>
    %119 = tpu.matmul %31, %118, %cst_91 {dimension_numbers = #tpu.dot_dimension_numbers<[1], [0], [0], [1], [0, 0, 1, 1], [], []>} : vector<8x32xbf16>, vector<32x4xbf16>, vector<8x4xf32> -> vector<8x4xf32>
    %c0_92 = arith.constant 0 : index
    %c2_93 = arith.constant 2 : index
    %c0_94 = arith.constant 0 : index
    %c0_95 = arith.constant 0 : index
    %120 = vector.load %arg7[%c0_92, %c2_93, %c0_94, %c0_95] : memref<1x8x1x4xf32, #tpu.memory_space<vmem>>, vector<1x1x1x4xf32>
    %121 = vector.shape_cast %120 : vector<1x1x1x4xf32> to vector<1x4xf32>
    %122 = vector.broadcast %121 : vector<1x4xf32> to vector<8x4xf32>
    %123 = arith.addf %119, %122 : vector<8x4xf32>
    %c0_96 = arith.constant 0 : index
    %c2_97 = arith.constant 2 : index
    %c0_98 = arith.constant 0 : index
    %c0_99 = arith.constant 0 : index
    %124 = vector.load %arg8[%c0_96, %c2_97, %c0_98, %c0_99] : memref<1x8x32x4xbf16, #tpu.memory_space<vmem>>, vector<1x1x32x4xbf16>
    %125 = vector.shape_cast %124 : vector<1x1x32x4xbf16> to vector<32x4xbf16>
    %cst_100 = arith.constant dense<0.000000e+00> : vector<8x4xf32>
    %126 = tpu.matmul %31, %125, %cst_100 {dimension_numbers = #tpu.dot_dimension_numbers<[1], [0], [0], [1], [0, 0, 1, 1], [], []>} : vector<8x32xbf16>, vector<32x4xbf16>, vector<8x4xf32> -> vector<8x4xf32>
    %c0_101 = arith.constant 0 : index
    %c2_102 = arith.constant 2 : index
    %c0_103 = arith.constant 0 : index
    %c0_104 = arith.constant 0 : index
    %127 = vector.load %arg9[%c0_101, %c2_102, %c0_103, %c0_104] : memref<1x8x1x4xf32, #tpu.memory_space<vmem>>, vector<1x1x1x4xf32>
    %128 = vector.shape_cast %127 : vector<1x1x1x4xf32> to vector<1x4xf32>
    %129 = vector.broadcast %128 : vector<1x4xf32> to vector<8x4xf32>
    %130 = arith.addf %126, %129 : vector<8x4xf32>
    %c0_105 = arith.constant 0 : index
    %c2_106 = arith.constant 2 : index
    %c0_107 = arith.constant 0 : index
    %c0_108 = arith.constant 0 : index
    %131 = vector.load %arg10[%c0_105, %c2_106, %c0_107, %c0_108] : memref<1x8x32x4xbf16, #tpu.memory_space<vmem>>, vector<1x1x32x4xbf16>
    %132 = vector.shape_cast %131 : vector<1x1x32x4xbf16> to vector<32x4xbf16>
    %cst_109 = arith.constant dense<0.000000e+00> : vector<8x4xf32>
    %133 = tpu.matmul %31, %132, %cst_109 {dimension_numbers = #tpu.dot_dimension_numbers<[1], [0], [0], [1], [0, 0, 1, 1], [], []>} : vector<8x32xbf16>, vector<32x4xbf16>, vector<8x4xf32> -> vector<8x4xf32>
    %c0_110 = arith.constant 0 : index
    %c2_111 = arith.constant 2 : index
    %c0_112 = arith.constant 0 : index
    %c0_113 = arith.constant 0 : index
    %134 = vector.load %arg11[%c0_110, %c2_111, %c0_112, %c0_113] : memref<1x8x1x4xf32, #tpu.memory_space<vmem>>, vector<1x1x1x4xf32>
    %135 = vector.shape_cast %134 : vector<1x1x1x4xf32> to vector<1x4xf32>
    %136 = vector.broadcast %135 : vector<1x4xf32> to vector<8x4xf32>
    %137 = arith.addf %133, %136 : vector<8x4xf32>
    %138 = tpu.transpose %130, [1, 0] : vector<8x4xf32> -> vector<4x8xf32>
    %cst_114 = arith.constant dense<0.000000e+00> : vector<8x8xf32>
    %139 = tpu.matmul %123, %138, %cst_114 {dimension_numbers = #tpu.dot_dimension_numbers<[1], [0], [0], [1], [0, 0, 1, 1], [], []>} : vector<8x4xf32>, vector<4x8xf32>, vector<8x8xf32> -> vector<8x8xf32>
    %cst_115 = arith.constant 5.000000e-01 : f32
    %140 = vector.broadcast %cst_115 : f32 to vector<8x8xf32>
    %141 = arith.mulf %139, %140 : vector<8x8xf32>
    %142 = arith.addf %141, %4 : vector<8x8xf32>
    %cst_116 = arith.constant dense<0xFF800000> : vector<8xf32>
    %143 = vector.multi_reduction <maximumf>, %142, %cst_116 [1] : vector<8x8xf32> to vector<8xf32>
    %144 = vector.shape_cast %143 : vector<8xf32> to vector<8x1xf32>
    %145 = vector.broadcast %144 : vector<8x1xf32> to vector<8x8xf32>
    %146 = arith.subf %142, %145 : vector<8x8xf32>
    %147 = math.exp %146 : vector<8x8xf32>
    %cst_117 = arith.constant dense<0.000000e+00> : vector<8xf32>
    %148 = vector.multi_reduction <add>, %147, %cst_117 [1] : vector<8x8xf32> to vector<8xf32>
    %149 = vector.shape_cast %148 : vector<8xf32> to vector<8x1xf32>
    %150 = tpu.reciprocal %149 {approx = true} : vector<8x1xf32> -> vector<8x1xf32>
    %151 = vector.broadcast %150 : vector<8x1xf32> to vector<8x8xf32>
    %152 = arith.mulf %147, %151 : vector<8x8xf32>
    %cst_118 = arith.constant dense<0.000000e+00> : vector<8x4xf32>
    %153 = tpu.matmul %152, %137, %cst_118 {dimension_numbers = #tpu.dot_dimension_numbers<[1], [0], [0], [1], [0, 0, 1, 1], [], []>} : vector<8x8xf32>, vector<8x4xf32>, vector<8x4xf32> -> vector<8x4xf32>
    %154 = arith.truncf %153 : vector<8x4xf32> to vector<8x4xbf16>
    %c0_119 = arith.constant 0 : index
    %c2_120 = arith.constant 2 : index
    %c0_121 = arith.constant 0 : index
    %c0_122 = arith.constant 0 : index
    %155 = vector.load %arg12[%c0_119, %c2_120, %c0_121, %c0_122] : memref<1x8x4x32xbf16, #tpu.memory_space<vmem>>, vector<1x1x4x32xbf16>
    %156 = vector.shape_cast %155 : vector<1x1x4x32xbf16> to vector<4x32xbf16>
    %cst_123 = arith.constant dense<0.000000e+00> : vector<8x32xf32>
    %157 = tpu.matmul %154, %156, %cst_123 {dimension_numbers = #tpu.dot_dimension_numbers<[1], [0], [0], [1], [0, 0, 1, 1], [], []>} : vector<8x4xbf16>, vector<4x32xbf16>, vector<8x32xf32> -> vector<8x32xf32>
    %158 = arith.addf %116, %157 : vector<8x32xf32>
    %c0_124 = arith.constant 0 : index
    %c3 = arith.constant 3 : index
    %c0_125 = arith.constant 0 : index
    %c0_126 = arith.constant 0 : index
    %159 = vector.load %arg6[%c0_124, %c3, %c0_125, %c0_126] : memref<1x8x32x4xbf16, #tpu.memory_space<vmem>>, vector<1x1x32x4xbf16>
    %160 = vector.shape_cast %159 : vector<1x1x32x4xbf16> to vector<32x4xbf16>
    %cst_127 = arith.constant dense<0.000000e+00> : vector<8x4xf32>
    %161 = tpu.matmul %31, %160, %cst_127 {dimension_numbers = #tpu.dot_dimension_numbers<[1], [0], [0], [1], [0, 0, 1, 1], [], []>} : vector<8x32xbf16>, vector<32x4xbf16>, vector<8x4xf32> -> vector<8x4xf32>
    %c0_128 = arith.constant 0 : index
    %c3_129 = arith.constant 3 : index
    %c0_130 = arith.constant 0 : index
    %c0_131 = arith.constant 0 : index
    %162 = vector.load %arg7[%c0_128, %c3_129, %c0_130, %c0_131] : memref<1x8x1x4xf32, #tpu.memory_space<vmem>>, vector<1x1x1x4xf32>
    %163 = vector.shape_cast %162 : vector<1x1x1x4xf32> to vector<1x4xf32>
    %164 = vector.broadcast %163 : vector<1x4xf32> to vector<8x4xf32>
    %165 = arith.addf %161, %164 : vector<8x4xf32>
    %c0_132 = arith.constant 0 : index
    %c3_133 = arith.constant 3 : index
    %c0_134 = arith.constant 0 : index
    %c0_135 = arith.constant 0 : index
    %166 = vector.load %arg8[%c0_132, %c3_133, %c0_134, %c0_135] : memref<1x8x32x4xbf16, #tpu.memory_space<vmem>>, vector<1x1x32x4xbf16>
    %167 = vector.shape_cast %166 : vector<1x1x32x4xbf16> to vector<32x4xbf16>
    %cst_136 = arith.constant dense<0.000000e+00> : vector<8x4xf32>
    %168 = tpu.matmul %31, %167, %cst_136 {dimension_numbers = #tpu.dot_dimension_numbers<[1], [0], [0], [1], [0, 0, 1, 1], [], []>} : vector<8x32xbf16>, vector<32x4xbf16>, vector<8x4xf32> -> vector<8x4xf32>
    %c0_137 = arith.constant 0 : index
    %c3_138 = arith.constant 3 : index
    %c0_139 = arith.constant 0 : index
    %c0_140 = arith.constant 0 : index
    %169 = vector.load %arg9[%c0_137, %c3_138, %c0_139, %c0_140] : memref<1x8x1x4xf32, #tpu.memory_space<vmem>>, vector<1x1x1x4xf32>
    %170 = vector.shape_cast %169 : vector<1x1x1x4xf32> to vector<1x4xf32>
    %171 = vector.broadcast %170 : vector<1x4xf32> to vector<8x4xf32>
    %172 = arith.addf %168, %171 : vector<8x4xf32>
    %c0_141 = arith.constant 0 : index
    %c3_142 = arith.constant 3 : index
    %c0_143 = arith.constant 0 : index
    %c0_144 = arith.constant 0 : index
    %173 = vector.load %arg10[%c0_141, %c3_142, %c0_143, %c0_144] : memref<1x8x32x4xbf16, #tpu.memory_space<vmem>>, vector<1x1x32x4xbf16>
    %174 = vector.shape_cast %173 : vector<1x1x32x4xbf16> to vector<32x4xbf16>
    %cst_145 = arith.constant dense<0.000000e+00> : vector<8x4xf32>
    %175 = tpu.matmul %31, %174, %cst_145 {dimension_numbers = #tpu.dot_dimension_numbers<[1], [0], [0], [1], [0, 0, 1, 1], [], []>} : vector<8x32xbf16>, vector<32x4xbf16>, vector<8x4xf32> -> vector<8x4xf32>
    %c0_146 = arith.constant 0 : index
    %c3_147 = arith.constant 3 : index
    %c0_148 = arith.constant 0 : index
    %c0_149 = arith.constant 0 : index
    %176 = vector.load %arg11[%c0_146, %c3_147, %c0_148, %c0_149] : memref<1x8x1x4xf32, #tpu.memory_space<vmem>>, vector<1x1x1x4xf32>
    %177 = vector.shape_cast %176 : vector<1x1x1x4xf32> to vector<1x4xf32>
    %178 = vector.broadcast %177 : vector<1x4xf32> to vector<8x4xf32>
    %179 = arith.addf %175, %178 : vector<8x4xf32>
    %180 = tpu.transpose %172, [1, 0] : vector<8x4xf32> -> vector<4x8xf32>
    %cst_150 = arith.constant dense<0.000000e+00> : vector<8x8xf32>
    %181 = tpu.matmul %165, %180, %cst_150 {dimension_numbers = #tpu.dot_dimension_numbers<[1], [0], [0], [1], [0, 0, 1, 1], [], []>} : vector<8x4xf32>, vector<4x8xf32>, vector<8x8xf32> -> vector<8x8xf32>
    %cst_151 = arith.constant 5.000000e-01 : f32
    %182 = vector.broadcast %cst_151 : f32 to vector<8x8xf32>
    %183 = arith.mulf %181, %182 : vector<8x8xf32>
    %184 = arith.addf %183, %4 : vector<8x8xf32>
    %cst_152 = arith.constant dense<0xFF800000> : vector<8xf32>
    %185 = vector.multi_reduction <maximumf>, %184, %cst_152 [1] : vector<8x8xf32> to vector<8xf32>
    %186 = vector.shape_cast %185 : vector<8xf32> to vector<8x1xf32>
    %187 = vector.broadcast %186 : vector<8x1xf32> to vector<8x8xf32>
    %188 = arith.subf %184, %187 : vector<8x8xf32>
    %189 = math.exp %188 : vector<8x8xf32>
    %cst_153 = arith.constant dense<0.000000e+00> : vector<8xf32>
    %190 = vector.multi_reduction <add>, %189, %cst_153 [1] : vector<8x8xf32> to vector<8xf32>
    %191 = vector.shape_cast %190 : vector<8xf32> to vector<8x1xf32>
    %192 = tpu.reciprocal %191 {approx = true} : vector<8x1xf32> -> vector<8x1xf32>
    %193 = vector.broadcast %192 : vector<8x1xf32> to vector<8x8xf32>
    %194 = arith.mulf %189, %193 : vector<8x8xf32>
    %cst_154 = arith.constant dense<0.000000e+00> : vector<8x4xf32>
    %195 = tpu.matmul %194, %179, %cst_154 {dimension_numbers = #tpu.dot_dimension_numbers<[1], [0], [0], [1], [0, 0, 1, 1], [], []>} : vector<8x8xf32>, vector<8x4xf32>, vector<8x4xf32> -> vector<8x4xf32>
    %196 = arith.truncf %195 : vector<8x4xf32> to vector<8x4xbf16>
    %c0_155 = arith.constant 0 : index
    %c3_156 = arith.constant 3 : index
    %c0_157 = arith.constant 0 : index
    %c0_158 = arith.constant 0 : index
    %197 = vector.load %arg12[%c0_155, %c3_156, %c0_157, %c0_158] : memref<1x8x4x32xbf16, #tpu.memory_space<vmem>>, vector<1x1x4x32xbf16>
    %198 = vector.shape_cast %197 : vector<1x1x4x32xbf16> to vector<4x32xbf16>
    %cst_159 = arith.constant dense<0.000000e+00> : vector<8x32xf32>
    %199 = tpu.matmul %196, %198, %cst_159 {dimension_numbers = #tpu.dot_dimension_numbers<[1], [0], [0], [1], [0, 0, 1, 1], [], []>} : vector<8x4xbf16>, vector<4x32xbf16>, vector<8x32xf32> -> vector<8x32xf32>
    %200 = arith.addf %158, %199 : vector<8x32xf32>
    %c0_160 = arith.constant 0 : index
    %c4 = arith.constant 4 : index
    %c0_161 = arith.constant 0 : index
    %c0_162 = arith.constant 0 : index
    %201 = vector.load %arg6[%c0_160, %c4, %c0_161, %c0_162] : memref<1x8x32x4xbf16, #tpu.memory_space<vmem>>, vector<1x1x32x4xbf16>
    %202 = vector.shape_cast %201 : vector<1x1x32x4xbf16> to vector<32x4xbf16>
    %cst_163 = arith.constant dense<0.000000e+00> : vector<8x4xf32>
    %203 = tpu.matmul %31, %202, %cst_163 {dimension_numbers = #tpu.dot_dimension_numbers<[1], [0], [0], [1], [0, 0, 1, 1], [], []>} : vector<8x32xbf16>, vector<32x4xbf16>, vector<8x4xf32> -> vector<8x4xf32>
    %c0_164 = arith.constant 0 : index
    %c4_165 = arith.constant 4 : index
    %c0_166 = arith.constant 0 : index
    %c0_167 = arith.constant 0 : index
    %204 = vector.load %arg7[%c0_164, %c4_165, %c0_166, %c0_167] : memref<1x8x1x4xf32, #tpu.memory_space<vmem>>, vector<1x1x1x4xf32>
    %205 = vector.shape_cast %204 : vector<1x1x1x4xf32> to vector<1x4xf32>
    %206 = vector.broadcast %205 : vector<1x4xf32> to vector<8x4xf32>
    %207 = arith.addf %203, %206 : vector<8x4xf32>
    %c0_168 = arith.constant 0 : index
    %c4_169 = arith.constant 4 : index
    %c0_170 = arith.constant 0 : index
    %c0_171 = arith.constant 0 : index
    %208 = vector.load %arg8[%c0_168, %c4_169, %c0_170, %c0_171] : memref<1x8x32x4xbf16, #tpu.memory_space<vmem>>, vector<1x1x32x4xbf16>
    %209 = vector.shape_cast %208 : vector<1x1x32x4xbf16> to vector<32x4xbf16>
    %cst_172 = arith.constant dense<0.000000e+00> : vector<8x4xf32>
    %210 = tpu.matmul %31, %209, %cst_172 {dimension_numbers = #tpu.dot_dimension_numbers<[1], [0], [0], [1], [0, 0, 1, 1], [], []>} : vector<8x32xbf16>, vector<32x4xbf16>, vector<8x4xf32> -> vector<8x4xf32>
    %c0_173 = arith.constant 0 : index
    %c4_174 = arith.constant 4 : index
    %c0_175 = arith.constant 0 : index
    %c0_176 = arith.constant 0 : index
    %211 = vector.load %arg9[%c0_173, %c4_174, %c0_175, %c0_176] : memref<1x8x1x4xf32, #tpu.memory_space<vmem>>, vector<1x1x1x4xf32>
    %212 = vector.shape_cast %211 : vector<1x1x1x4xf32> to vector<1x4xf32>
    %213 = vector.broadcast %212 : vector<1x4xf32> to vector<8x4xf32>
    %214 = arith.addf %210, %213 : vector<8x4xf32>
    %c0_177 = arith.constant 0 : index
    %c4_178 = arith.constant 4 : index
    %c0_179 = arith.constant 0 : index
    %c0_180 = arith.constant 0 : index
    %215 = vector.load %arg10[%c0_177, %c4_178, %c0_179, %c0_180] : memref<1x8x32x4xbf16, #tpu.memory_space<vmem>>, vector<1x1x32x4xbf16>
    %216 = vector.shape_cast %215 : vector<1x1x32x4xbf16> to vector<32x4xbf16>
    %cst_181 = arith.constant dense<0.000000e+00> : vector<8x4xf32>
    %217 = tpu.matmul %31, %216, %cst_181 {dimension_numbers = #tpu.dot_dimension_numbers<[1], [0], [0], [1], [0, 0, 1, 1], [], []>} : vector<8x32xbf16>, vector<32x4xbf16>, vector<8x4xf32> -> vector<8x4xf32>
    %c0_182 = arith.constant 0 : index
    %c4_183 = arith.constant 4 : index
    %c0_184 = arith.constant 0 : index
    %c0_185 = arith.constant 0 : index
    %218 = vector.load %arg11[%c0_182, %c4_183, %c0_184, %c0_185] : memref<1x8x1x4xf32, #tpu.memory_space<vmem>>, vector<1x1x1x4xf32>
    %219 = vector.shape_cast %218 : vector<1x1x1x4xf32> to vector<1x4xf32>
    %220 = vector.broadcast %219 : vector<1x4xf32> to vector<8x4xf32>
    %221 = arith.addf %217, %220 : vector<8x4xf32>
    %222 = tpu.transpose %214, [1, 0] : vector<8x4xf32> -> vector<4x8xf32>
    %cst_186 = arith.constant dense<0.000000e+00> : vector<8x8xf32>
    %223 = tpu.matmul %207, %222, %cst_186 {dimension_numbers = #tpu.dot_dimension_numbers<[1], [0], [0], [1], [0, 0, 1, 1], [], []>} : vector<8x4xf32>, vector<4x8xf32>, vector<8x8xf32> -> vector<8x8xf32>
    %cst_187 = arith.constant 5.000000e-01 : f32
    %224 = vector.broadcast %cst_187 : f32 to vector<8x8xf32>
    %225 = arith.mulf %223, %224 : vector<8x8xf32>
    %226 = arith.addf %225, %4 : vector<8x8xf32>
    %cst_188 = arith.constant dense<0xFF800000> : vector<8xf32>
    %227 = vector.multi_reduction <maximumf>, %226, %cst_188 [1] : vector<8x8xf32> to vector<8xf32>
    %228 = vector.shape_cast %227 : vector<8xf32> to vector<8x1xf32>
    %229 = vector.broadcast %228 : vector<8x1xf32> to vector<8x8xf32>
    %230 = arith.subf %226, %229 : vector<8x8xf32>
    %231 = math.exp %230 : vector<8x8xf32>
    %cst_189 = arith.constant dense<0.000000e+00> : vector<8xf32>
    %232 = vector.multi_reduction <add>, %231, %cst_189 [1] : vector<8x8xf32> to vector<8xf32>
    %233 = vector.shape_cast %232 : vector<8xf32> to vector<8x1xf32>
    %234 = tpu.reciprocal %233 {approx = true} : vector<8x1xf32> -> vector<8x1xf32>
    %235 = vector.broadcast %234 : vector<8x1xf32> to vector<8x8xf32>
    %236 = arith.mulf %231, %235 : vector<8x8xf32>
    %cst_190 = arith.constant dense<0.000000e+00> : vector<8x4xf32>
    %237 = tpu.matmul %236, %221, %cst_190 {dimension_numbers = #tpu.dot_dimension_numbers<[1], [0], [0], [1], [0, 0, 1, 1], [], []>} : vector<8x8xf32>, vector<8x4xf32>, vector<8x4xf32> -> vector<8x4xf32>
    %238 = arith.truncf %237 : vector<8x4xf32> to vector<8x4xbf16>
    %c0_191 = arith.constant 0 : index
    %c4_192 = arith.constant 4 : index
    %c0_193 = arith.constant 0 : index
    %c0_194 = arith.constant 0 : index
    %239 = vector.load %arg12[%c0_191, %c4_192, %c0_193, %c0_194] : memref<1x8x4x32xbf16, #tpu.memory_space<vmem>>, vector<1x1x4x32xbf16>
    %240 = vector.shape_cast %239 : vector<1x1x4x32xbf16> to vector<4x32xbf16>
    %cst_195 = arith.constant dense<0.000000e+00> : vector<8x32xf32>
    %241 = tpu.matmul %238, %240, %cst_195 {dimension_numbers = #tpu.dot_dimension_numbers<[1], [0], [0], [1], [0, 0, 1, 1], [], []>} : vector<8x4xbf16>, vector<4x32xbf16>, vector<8x32xf32> -> vector<8x32xf32>
    %242 = arith.addf %200, %241 : vector<8x32xf32>
    %c0_196 = arith.constant 0 : index
    %c5 = arith.constant 5 : index
    %c0_197 = arith.constant 0 : index
    %c0_198 = arith.constant 0 : index
    %243 = vector.load %arg6[%c0_196, %c5, %c0_197, %c0_198] : memref<1x8x32x4xbf16, #tpu.memory_space<vmem>>, vector<1x1x32x4xbf16>
    %244 = vector.shape_cast %243 : vector<1x1x32x4xbf16> to vector<32x4xbf16>
    %cst_199 = arith.constant dense<0.000000e+00> : vector<8x4xf32>
    %245 = tpu.matmul %31, %244, %cst_199 {dimension_numbers = #tpu.dot_dimension_numbers<[1], [0], [0], [1], [0, 0, 1, 1], [], []>} : vector<8x32xbf16>, vector<32x4xbf16>, vector<8x4xf32> -> vector<8x4xf32>
    %c0_200 = arith.constant 0 : index
    %c5_201 = arith.constant 5 : index
    %c0_202 = arith.constant 0 : index
    %c0_203 = arith.constant 0 : index
    %246 = vector.load %arg7[%c0_200, %c5_201, %c0_202, %c0_203] : memref<1x8x1x4xf32, #tpu.memory_space<vmem>>, vector<1x1x1x4xf32>
    %247 = vector.shape_cast %246 : vector<1x1x1x4xf32> to vector<1x4xf32>
    %248 = vector.broadcast %247 : vector<1x4xf32> to vector<8x4xf32>
    %249 = arith.addf %245, %248 : vector<8x4xf32>
    %c0_204 = arith.constant 0 : index
    %c5_205 = arith.constant 5 : index
    %c0_206 = arith.constant 0 : index
    %c0_207 = arith.constant 0 : index
    %250 = vector.load %arg8[%c0_204, %c5_205, %c0_206, %c0_207] : memref<1x8x32x4xbf16, #tpu.memory_space<vmem>>, vector<1x1x32x4xbf16>
    %251 = vector.shape_cast %250 : vector<1x1x32x4xbf16> to vector<32x4xbf16>
    %cst_208 = arith.constant dense<0.000000e+00> : vector<8x4xf32>
    %252 = tpu.matmul %31, %251, %cst_208 {dimension_numbers = #tpu.dot_dimension_numbers<[1], [0], [0], [1], [0, 0, 1, 1], [], []>} : vector<8x32xbf16>, vector<32x4xbf16>, vector<8x4xf32> -> vector<8x4xf32>
    %c0_209 = arith.constant 0 : index
    %c5_210 = arith.constant 5 : index
    %c0_211 = arith.constant 0 : index
    %c0_212 = arith.constant 0 : index
    %253 = vector.load %arg9[%c0_209, %c5_210, %c0_211, %c0_212] : memref<1x8x1x4xf32, #tpu.memory_space<vmem>>, vector<1x1x1x4xf32>
    %254 = vector.shape_cast %253 : vector<1x1x1x4xf32> to vector<1x4xf32>
    %255 = vector.broadcast %254 : vector<1x4xf32> to vector<8x4xf32>
    %256 = arith.addf %252, %255 : vector<8x4xf32>
    %c0_213 = arith.constant 0 : index
    %c5_214 = arith.constant 5 : index
    %c0_215 = arith.constant 0 : index
    %c0_216 = arith.constant 0 : index
    %257 = vector.load %arg10[%c0_213, %c5_214, %c0_215, %c0_216] : memref<1x8x32x4xbf16, #tpu.memory_space<vmem>>, vector<1x1x32x4xbf16>
    %258 = vector.shape_cast %257 : vector<1x1x32x4xbf16> to vector<32x4xbf16>
    %cst_217 = arith.constant dense<0.000000e+00> : vector<8x4xf32>
    %259 = tpu.matmul %31, %258, %cst_217 {dimension_numbers = #tpu.dot_dimension_numbers<[1], [0], [0], [1], [0, 0, 1, 1], [], []>} : vector<8x32xbf16>, vector<32x4xbf16>, vector<8x4xf32> -> vector<8x4xf32>
    %c0_218 = arith.constant 0 : index
    %c5_219 = arith.constant 5 : index
    %c0_220 = arith.constant 0 : index
    %c0_221 = arith.constant 0 : index
    %260 = vector.load %arg11[%c0_218, %c5_219, %c0_220, %c0_221] : memref<1x8x1x4xf32, #tpu.memory_space<vmem>>, vector<1x1x1x4xf32>
    %261 = vector.shape_cast %260 : vector<1x1x1x4xf32> to vector<1x4xf32>
    %262 = vector.broadcast %261 : vector<1x4xf32> to vector<8x4xf32>
    %263 = arith.addf %259, %262 : vector<8x4xf32>
    %264 = tpu.transpose %256, [1, 0] : vector<8x4xf32> -> vector<4x8xf32>
    %cst_222 = arith.constant dense<0.000000e+00> : vector<8x8xf32>
    %265 = tpu.matmul %249, %264, %cst_222 {dimension_numbers = #tpu.dot_dimension_numbers<[1], [0], [0], [1], [0, 0, 1, 1], [], []>} : vector<8x4xf32>, vector<4x8xf32>, vector<8x8xf32> -> vector<8x8xf32>
    %cst_223 = arith.constant 5.000000e-01 : f32
    %266 = vector.broadcast %cst_223 : f32 to vector<8x8xf32>
    %267 = arith.mulf %265, %266 : vector<8x8xf32>
    %268 = arith.addf %267, %4 : vector<8x8xf32>
    %cst_224 = arith.constant dense<0xFF800000> : vector<8xf32>
    %269 = vector.multi_reduction <maximumf>, %268, %cst_224 [1] : vector<8x8xf32> to vector<8xf32>
    %270 = vector.shape_cast %269 : vector<8xf32> to vector<8x1xf32>
    %271 = vector.broadcast %270 : vector<8x1xf32> to vector<8x8xf32>
    %272 = arith.subf %268, %271 : vector<8x8xf32>
    %273 = math.exp %272 : vector<8x8xf32>
    %cst_225 = arith.constant dense<0.000000e+00> : vector<8xf32>
    %274 = vector.multi_reduction <add>, %273, %cst_225 [1] : vector<8x8xf32> to vector<8xf32>
    %275 = vector.shape_cast %274 : vector<8xf32> to vector<8x1xf32>
    %276 = tpu.reciprocal %275 {approx = true} : vector<8x1xf32> -> vector<8x1xf32>
    %277 = vector.broadcast %276 : vector<8x1xf32> to vector<8x8xf32>
    %278 = arith.mulf %273, %277 : vector<8x8xf32>
    %cst_226 = arith.constant dense<0.000000e+00> : vector<8x4xf32>
    %279 = tpu.matmul %278, %263, %cst_226 {dimension_numbers = #tpu.dot_dimension_numbers<[1], [0], [0], [1], [0, 0, 1, 1], [], []>} : vector<8x8xf32>, vector<8x4xf32>, vector<8x4xf32> -> vector<8x4xf32>
    %280 = arith.truncf %279 : vector<8x4xf32> to vector<8x4xbf16>
    %c0_227 = arith.constant 0 : index
    %c5_228 = arith.constant 5 : index
    %c0_229 = arith.constant 0 : index
    %c0_230 = arith.constant 0 : index
    %281 = vector.load %arg12[%c0_227, %c5_228, %c0_229, %c0_230] : memref<1x8x4x32xbf16, #tpu.memory_space<vmem>>, vector<1x1x4x32xbf16>
    %282 = vector.shape_cast %281 : vector<1x1x4x32xbf16> to vector<4x32xbf16>
    %cst_231 = arith.constant dense<0.000000e+00> : vector<8x32xf32>
    %283 = tpu.matmul %280, %282, %cst_231 {dimension_numbers = #tpu.dot_dimension_numbers<[1], [0], [0], [1], [0, 0, 1, 1], [], []>} : vector<8x4xbf16>, vector<4x32xbf16>, vector<8x32xf32> -> vector<8x32xf32>
    %284 = arith.addf %242, %283 : vector<8x32xf32>
    %c0_232 = arith.constant 0 : index
    %c6 = arith.constant 6 : index
    %c0_233 = arith.constant 0 : index
    %c0_234 = arith.constant 0 : index
    %285 = vector.load %arg6[%c0_232, %c6, %c0_233, %c0_234] : memref<1x8x32x4xbf16, #tpu.memory_space<vmem>>, vector<1x1x32x4xbf16>
    %286 = vector.shape_cast %285 : vector<1x1x32x4xbf16> to vector<32x4xbf16>
    %cst_235 = arith.constant dense<0.000000e+00> : vector<8x4xf32>
    %287 = tpu.matmul %31, %286, %cst_235 {dimension_numbers = #tpu.dot_dimension_numbers<[1], [0], [0], [1], [0, 0, 1, 1], [], []>} : vector<8x32xbf16>, vector<32x4xbf16>, vector<8x4xf32> -> vector<8x4xf32>
    %c0_236 = arith.constant 0 : index
    %c6_237 = arith.constant 6 : index
    %c0_238 = arith.constant 0 : index
    %c0_239 = arith.constant 0 : index
    %288 = vector.load %arg7[%c0_236, %c6_237, %c0_238, %c0_239] : memref<1x8x1x4xf32, #tpu.memory_space<vmem>>, vector<1x1x1x4xf32>
    %289 = vector.shape_cast %288 : vector<1x1x1x4xf32> to vector<1x4xf32>
    %290 = vector.broadcast %289 : vector<1x4xf32> to vector<8x4xf32>
    %291 = arith.addf %287, %290 : vector<8x4xf32>
    %c0_240 = arith.constant 0 : index
    %c6_241 = arith.constant 6 : index
    %c0_242 = arith.constant 0 : index
    %c0_243 = arith.constant 0 : index
    %292 = vector.load %arg8[%c0_240, %c6_241, %c0_242, %c0_243] : memref<1x8x32x4xbf16, #tpu.memory_space<vmem>>, vector<1x1x32x4xbf16>
    %293 = vector.shape_cast %292 : vector<1x1x32x4xbf16> to vector<32x4xbf16>
    %cst_244 = arith.constant dense<0.000000e+00> : vector<8x4xf32>
    %294 = tpu.matmul %31, %293, %cst_244 {dimension_numbers = #tpu.dot_dimension_numbers<[1], [0], [0], [1], [0, 0, 1, 1], [], []>} : vector<8x32xbf16>, vector<32x4xbf16>, vector<8x4xf32> -> vector<8x4xf32>
    %c0_245 = arith.constant 0 : index
    %c6_246 = arith.constant 6 : index
    %c0_247 = arith.constant 0 : index
    %c0_248 = arith.constant 0 : index
    %295 = vector.load %arg9[%c0_245, %c6_246, %c0_247, %c0_248] : memref<1x8x1x4xf32, #tpu.memory_space<vmem>>, vector<1x1x1x4xf32>
    %296 = vector.shape_cast %295 : vector<1x1x1x4xf32> to vector<1x4xf32>
    %297 = vector.broadcast %296 : vector<1x4xf32> to vector<8x4xf32>
    %298 = arith.addf %294, %297 : vector<8x4xf32>
    %c0_249 = arith.constant 0 : index
    %c6_250 = arith.constant 6 : index
    %c0_251 = arith.constant 0 : index
    %c0_252 = arith.constant 0 : index
    %299 = vector.load %arg10[%c0_249, %c6_250, %c0_251, %c0_252] : memref<1x8x32x4xbf16, #tpu.memory_space<vmem>>, vector<1x1x32x4xbf16>
    %300 = vector.shape_cast %299 : vector<1x1x32x4xbf16> to vector<32x4xbf16>
    %cst_253 = arith.constant dense<0.000000e+00> : vector<8x4xf32>
    %301 = tpu.matmul %31, %300, %cst_253 {dimension_numbers = #tpu.dot_dimension_numbers<[1], [0], [0], [1], [0, 0, 1, 1], [], []>} : vector<8x32xbf16>, vector<32x4xbf16>, vector<8x4xf32> -> vector<8x4xf32>
    %c0_254 = arith.constant 0 : index
    %c6_255 = arith.constant 6 : index
    %c0_256 = arith.constant 0 : index
    %c0_257 = arith.constant 0 : index
    %302 = vector.load %arg11[%c0_254, %c6_255, %c0_256, %c0_257] : memref<1x8x1x4xf32, #tpu.memory_space<vmem>>, vector<1x1x1x4xf32>
    %303 = vector.shape_cast %302 : vector<1x1x1x4xf32> to vector<1x4xf32>
    %304 = vector.broadcast %303 : vector<1x4xf32> to vector<8x4xf32>
    %305 = arith.addf %301, %304 : vector<8x4xf32>
    %306 = tpu.transpose %298, [1, 0] : vector<8x4xf32> -> vector<4x8xf32>
    %cst_258 = arith.constant dense<0.000000e+00> : vector<8x8xf32>
    %307 = tpu.matmul %291, %306, %cst_258 {dimension_numbers = #tpu.dot_dimension_numbers<[1], [0], [0], [1], [0, 0, 1, 1], [], []>} : vector<8x4xf32>, vector<4x8xf32>, vector<8x8xf32> -> vector<8x8xf32>
    %cst_259 = arith.constant 5.000000e-01 : f32
    %308 = vector.broadcast %cst_259 : f32 to vector<8x8xf32>
    %309 = arith.mulf %307, %308 : vector<8x8xf32>
    %310 = arith.addf %309, %4 : vector<8x8xf32>
    %cst_260 = arith.constant dense<0xFF800000> : vector<8xf32>
    %311 = vector.multi_reduction <maximumf>, %310, %cst_260 [1] : vector<8x8xf32> to vector<8xf32>
    %312 = vector.shape_cast %311 : vector<8xf32> to vector<8x1xf32>
    %313 = vector.broadcast %312 : vector<8x1xf32> to vector<8x8xf32>
    %314 = arith.subf %310, %313 : vector<8x8xf32>
    %315 = math.exp %314 : vector<8x8xf32>
    %cst_261 = arith.constant dense<0.000000e+00> : vector<8xf32>
    %316 = vector.multi_reduction <add>, %315, %cst_261 [1] : vector<8x8xf32> to vector<8xf32>
    %317 = vector.shape_cast %316 : vector<8xf32> to vector<8x1xf32>
    %318 = tpu.reciprocal %317 {approx = true} : vector<8x1xf32> -> vector<8x1xf32>
    %319 = vector.broadcast %318 : vector<8x1xf32> to vector<8x8xf32>
    %320 = arith.mulf %315, %319 : vector<8x8xf32>
    %cst_262 = arith.constant dense<0.000000e+00> : vector<8x4xf32>
    %321 = tpu.matmul %320, %305, %cst_262 {dimension_numbers = #tpu.dot_dimension_numbers<[1], [0], [0], [1], [0, 0, 1, 1], [], []>} : vector<8x8xf32>, vector<8x4xf32>, vector<8x4xf32> -> vector<8x4xf32>
    %322 = arith.truncf %321 : vector<8x4xf32> to vector<8x4xbf16>
    %c0_263 = arith.constant 0 : index
    %c6_264 = arith.constant 6 : index
    %c0_265 = arith.constant 0 : index
    %c0_266 = arith.constant 0 : index
    %323 = vector.load %arg12[%c0_263, %c6_264, %c0_265, %c0_266] : memref<1x8x4x32xbf16, #tpu.memory_space<vmem>>, vector<1x1x4x32xbf16>
    %324 = vector.shape_cast %323 : vector<1x1x4x32xbf16> to vector<4x32xbf16>
    %cst_267 = arith.constant dense<0.000000e+00> : vector<8x32xf32>
    %325 = tpu.matmul %322, %324, %cst_267 {dimension_numbers = #tpu.dot_dimension_numbers<[1], [0], [0], [1], [0, 0, 1, 1], [], []>} : vector<8x4xbf16>, vector<4x32xbf16>, vector<8x32xf32> -> vector<8x32xf32>
    %326 = arith.addf %284, %325 : vector<8x32xf32>
    %c0_268 = arith.constant 0 : index
    %c7 = arith.constant 7 : index
    %c0_269 = arith.constant 0 : index
    %c0_270 = arith.constant 0 : index
    %327 = vector.load %arg6[%c0_268, %c7, %c0_269, %c0_270] : memref<1x8x32x4xbf16, #tpu.memory_space<vmem>>, vector<1x1x32x4xbf16>
    %328 = vector.shape_cast %327 : vector<1x1x32x4xbf16> to vector<32x4xbf16>
    %cst_271 = arith.constant dense<0.000000e+00> : vector<8x4xf32>
    %329 = tpu.matmul %31, %328, %cst_271 {dimension_numbers = #tpu.dot_dimension_numbers<[1], [0], [0], [1], [0, 0, 1, 1], [], []>} : vector<8x32xbf16>, vector<32x4xbf16>, vector<8x4xf32> -> vector<8x4xf32>
    %c0_272 = arith.constant 0 : index
    %c7_273 = arith.constant 7 : index
    %c0_274 = arith.constant 0 : index
    %c0_275 = arith.constant 0 : index
    %330 = vector.load %arg7[%c0_272, %c7_273, %c0_274, %c0_275] : memref<1x8x1x4xf32, #tpu.memory_space<vmem>>, vector<1x1x1x4xf32>
    %331 = vector.shape_cast %330 : vector<1x1x1x4xf32> to vector<1x4xf32>
    %332 = vector.broadcast %331 : vector<1x4xf32> to vector<8x4xf32>
    %333 = arith.addf %329, %332 : vector<8x4xf32>
    %c0_276 = arith.constant 0 : index
    %c7_277 = arith.constant 7 : index
    %c0_278 = arith.constant 0 : index
    %c0_279 = arith.constant 0 : index
    %334 = vector.load %arg8[%c0_276, %c7_277, %c0_278, %c0_279] : memref<1x8x32x4xbf16, #tpu.memory_space<vmem>>, vector<1x1x32x4xbf16>
    %335 = vector.shape_cast %334 : vector<1x1x32x4xbf16> to vector<32x4xbf16>
    %cst_280 = arith.constant dense<0.000000e+00> : vector<8x4xf32>
    %336 = tpu.matmul %31, %335, %cst_280 {dimension_numbers = #tpu.dot_dimension_numbers<[1], [0], [0], [1], [0, 0, 1, 1], [], []>} : vector<8x32xbf16>, vector<32x4xbf16>, vector<8x4xf32> -> vector<8x4xf32>
    %c0_281 = arith.constant 0 : index
    %c7_282 = arith.constant 7 : index
    %c0_283 = arith.constant 0 : index
    %c0_284 = arith.constant 0 : index
    %337 = vector.load %arg9[%c0_281, %c7_282, %c0_283, %c0_284] : memref<1x8x1x4xf32, #tpu.memory_space<vmem>>, vector<1x1x1x4xf32>
    %338 = vector.shape_cast %337 : vector<1x1x1x4xf32> to vector<1x4xf32>
    %339 = vector.broadcast %338 : vector<1x4xf32> to vector<8x4xf32>
    %340 = arith.addf %336, %339 : vector<8x4xf32>
    %c0_285 = arith.constant 0 : index
    %c7_286 = arith.constant 7 : index
    %c0_287 = arith.constant 0 : index
    %c0_288 = arith.constant 0 : index
    %341 = vector.load %arg10[%c0_285, %c7_286, %c0_287, %c0_288] : memref<1x8x32x4xbf16, #tpu.memory_space<vmem>>, vector<1x1x32x4xbf16>
    %342 = vector.shape_cast %341 : vector<1x1x32x4xbf16> to vector<32x4xbf16>
    %cst_289 = arith.constant dense<0.000000e+00> : vector<8x4xf32>
    %343 = tpu.matmul %31, %342, %cst_289 {dimension_numbers = #tpu.dot_dimension_numbers<[1], [0], [0], [1], [0, 0, 1, 1], [], []>} : vector<8x32xbf16>, vector<32x4xbf16>, vector<8x4xf32> -> vector<8x4xf32>
    %c0_290 = arith.constant 0 : index
    %c7_291 = arith.constant 7 : index
    %c0_292 = arith.constant 0 : index
    %c0_293 = arith.constant 0 : index
    %344 = vector.load %arg11[%c0_290, %c7_291, %c0_292, %c0_293] : memref<1x8x1x4xf32, #tpu.memory_space<vmem>>, vector<1x1x1x4xf32>
    %345 = vector.shape_cast %344 : vector<1x1x1x4xf32> to vector<1x4xf32>
    %346 = vector.broadcast %345 : vector<1x4xf32> to vector<8x4xf32>
    %347 = arith.addf %343, %346 : vector<8x4xf32>
    %348 = tpu.transpose %340, [1, 0] : vector<8x4xf32> -> vector<4x8xf32>
    %cst_294 = arith.constant dense<0.000000e+00> : vector<8x8xf32>
    %349 = tpu.matmul %333, %348, %cst_294 {dimension_numbers = #tpu.dot_dimension_numbers<[1], [0], [0], [1], [0, 0, 1, 1], [], []>} : vector<8x4xf32>, vector<4x8xf32>, vector<8x8xf32> -> vector<8x8xf32>
    %cst_295 = arith.constant 5.000000e-01 : f32
    %350 = vector.broadcast %cst_295 : f32 to vector<8x8xf32>
    %351 = arith.mulf %349, %350 : vector<8x8xf32>
    %352 = arith.addf %351, %4 : vector<8x8xf32>
    %cst_296 = arith.constant dense<0xFF800000> : vector<8xf32>
    %353 = vector.multi_reduction <maximumf>, %352, %cst_296 [1] : vector<8x8xf32> to vector<8xf32>
    %354 = vector.shape_cast %353 : vector<8xf32> to vector<8x1xf32>
    %355 = vector.broadcast %354 : vector<8x1xf32> to vector<8x8xf32>
    %356 = arith.subf %352, %355 : vector<8x8xf32>
    %357 = math.exp %356 : vector<8x8xf32>
    %cst_297 = arith.constant dense<0.000000e+00> : vector<8xf32>
    %358 = vector.multi_reduction <add>, %357, %cst_297 [1] : vector<8x8xf32> to vector<8xf32>
    %359 = vector.shape_cast %358 : vector<8xf32> to vector<8x1xf32>
    %360 = tpu.reciprocal %359 {approx = true} : vector<8x1xf32> -> vector<8x1xf32>
    %361 = vector.broadcast %360 : vector<8x1xf32> to vector<8x8xf32>
    %362 = arith.mulf %357, %361 : vector<8x8xf32>
    %cst_298 = arith.constant dense<0.000000e+00> : vector<8x4xf32>
    %363 = tpu.matmul %362, %347, %cst_298 {dimension_numbers = #tpu.dot_dimension_numbers<[1], [0], [0], [1], [0, 0, 1, 1], [], []>} : vector<8x8xf32>, vector<8x4xf32>, vector<8x4xf32> -> vector<8x4xf32>
    %364 = arith.truncf %363 : vector<8x4xf32> to vector<8x4xbf16>
    %c0_299 = arith.constant 0 : index
    %c7_300 = arith.constant 7 : index
    %c0_301 = arith.constant 0 : index
    %c0_302 = arith.constant 0 : index
    %365 = vector.load %arg12[%c0_299, %c7_300, %c0_301, %c0_302] : memref<1x8x4x32xbf16, #tpu.memory_space<vmem>>, vector<1x1x4x32xbf16>
    %366 = vector.shape_cast %365 : vector<1x1x4x32xbf16> to vector<4x32xbf16>
    %cst_303 = arith.constant dense<0.000000e+00> : vector<8x32xf32>
    %367 = tpu.matmul %364, %366, %cst_303 {dimension_numbers = #tpu.dot_dimension_numbers<[1], [0], [0], [1], [0, 0, 1, 1], [], []>} : vector<8x4xbf16>, vector<4x32xbf16>, vector<8x32xf32> -> vector<8x32xf32>
    %368 = arith.addf %326, %367 : vector<8x32xf32>
    %369 = arith.addf %3, %368 : vector<8x32xf32>
    %c0_304 = arith.constant 0 : index
    %c0_305 = arith.constant 0 : index
    %c0_306 = arith.constant 0 : index
    %370 = vector.load %arg13[%c0_304, %c0_305, %c0_306] : memref<1x1x32xf32, #tpu.memory_space<vmem>>, vector<1x1x32xf32>
    %371 = vector.shape_cast %370 : vector<1x1x32xf32> to vector<1x32xf32>
    %372 = vector.broadcast %371 : vector<1x32xf32> to vector<8x32xf32>
    %373 = arith.addf %369, %372 : vector<8x32xf32>
    %c0_307 = arith.constant 0 : index
    %c0_308 = arith.constant 0 : index
    %c0_309 = arith.constant 0 : index
    %374 = vector.load %arg14[%c0_307, %c0_308, %c0_309] : memref<1x1x32xf32, #tpu.memory_space<vmem>>, vector<1x1x32xf32>
    %375 = vector.shape_cast %374 : vector<1x1x32xf32> to vector<1x32xf32>
    %c0_310 = arith.constant 0 : index
    %c0_311 = arith.constant 0 : index
    %c0_312 = arith.constant 0 : index
    %376 = vector.load %arg15[%c0_310, %c0_311, %c0_312] : memref<1x1x32xf32, #tpu.memory_space<vmem>>, vector<1x1x32xf32>
    %377 = vector.shape_cast %376 : vector<1x1x32xf32> to vector<1x32xf32>
    %cst_313 = arith.constant dense<0.000000e+00> : vector<8xf32>
    %378 = vector.multi_reduction <add>, %373, %cst_313 [1] : vector<8x32xf32> to vector<8xf32>
    %379 = vector.shape_cast %378 : vector<8xf32> to vector<8x1xf32>
    %cst_314 = arith.constant 3.200000e+01 : f32
    %380 = vector.broadcast %cst_314 : f32 to vector<8x1xf32>
    %381 = arith.divf %379, %380 : vector<8x1xf32>
    %382 = vector.broadcast %381 : vector<8x1xf32> to vector<8x32xf32>
    %383 = arith.subf %373, %382 : vector<8x32xf32>
    %384 = arith.mulf %383, %383 : vector<8x32xf32>
    %cst_315 = arith.constant dense<0.000000e+00> : vector<8xf32>
    %385 = vector.multi_reduction <add>, %384, %cst_315 [1] : vector<8x32xf32> to vector<8xf32>
    %386 = vector.shape_cast %385 : vector<8xf32> to vector<8x1xf32>
    %cst_316 = arith.constant 3.200000e+01 : f32
    %387 = vector.broadcast %cst_316 : f32 to vector<8x1xf32>
    %388 = arith.divf %386, %387 : vector<8x1xf32>
    %389 = vector.broadcast %381 : vector<8x1xf32> to vector<8x32xf32>
    %390 = arith.subf %373, %389 : vector<8x32xf32>
    %391 = vector.broadcast %375 : vector<1x32xf32> to vector<8x32xf32>
    %392 = arith.mulf %391, %390 : vector<8x32xf32>
    %cst_317 = arith.constant 9.99999997E-7 : f32
    %393 = vector.broadcast %cst_317 : f32 to vector<8x1xf32>
    %394 = arith.addf %388, %393 : vector<8x1xf32>
    %395 = math.rsqrt %394 : vector<8x1xf32>
    %396 = vector.broadcast %395 : vector<8x1xf32> to vector<8x32xf32>
    %397 = arith.mulf %392, %396 : vector<8x32xf32>
    %398 = vector.broadcast %377 : vector<1x32xf32> to vector<8x32xf32>
    %399 = arith.addf %397, %398 : vector<8x32xf32>
    %400 = arith.truncf %399 : vector<8x32xf32> to vector<8x32xbf16>
    %c0_318 = arith.constant 0 : index
    %c0_319 = arith.constant 0 : index
    %c0_320 = arith.constant 0 : index
    %401 = vector.load %arg16[%c0_318, %c0_319, %c0_320] : memref<1x32x64xbf16, #tpu.memory_space<vmem>>, vector<1x32x64xbf16>
    %402 = vector.shape_cast %401 : vector<1x32x64xbf16> to vector<32x64xbf16>
    %cst_321 = arith.constant dense<0.000000e+00> : vector<8x64xf32>
    %403 = tpu.matmul %400, %402, %cst_321 {dimension_numbers = #tpu.dot_dimension_numbers<[1], [0], [0], [1], [0, 0, 1, 1], [], []>} : vector<8x32xbf16>, vector<32x64xbf16>, vector<8x64xf32> -> vector<8x64xf32>
    %c0_322 = arith.constant 0 : index
    %c0_323 = arith.constant 0 : index
    %c0_324 = arith.constant 0 : index
    %404 = vector.load %arg17[%c0_322, %c0_323, %c0_324] : memref<1x1x64xf32, #tpu.memory_space<vmem>>, vector<1x1x64xf32>
    %405 = vector.shape_cast %404 : vector<1x1x64xf32> to vector<1x64xf32>
    %406 = vector.broadcast %405 : vector<1x64xf32> to vector<8x64xf32>
    %407 = arith.addf %403, %406 : vector<8x64xf32>
    %cst_325 = arith.constant 0.000000e+00 : f32
    %408 = vector.broadcast %cst_325 : f32 to vector<8x64xf32>
    %409 = arith.maximumf %407, %408 : vector<8x64xf32>
    %410 = arith.truncf %409 : vector<8x64xf32> to vector<8x64xbf16>
    %c0_326 = arith.constant 0 : index
    %c0_327 = arith.constant 0 : index
    %c0_328 = arith.constant 0 : index
    %411 = vector.load %arg18[%c0_326, %c0_327, %c0_328] : memref<1x64x32xbf16, #tpu.memory_space<vmem>>, vector<1x64x32xbf16>
    %412 = vector.shape_cast %411 : vector<1x64x32xbf16> to vector<64x32xbf16>
    %cst_329 = arith.constant dense<0.000000e+00> : vector<8x32xf32>
    %413 = tpu.matmul %410, %412, %cst_329 {dimension_numbers = #tpu.dot_dimension_numbers<[1], [0], [0], [1], [0, 0, 1, 1], [], []>} : vector<8x64xbf16>, vector<64x32xbf16>, vector<8x32xf32> -> vector<8x32xf32>
    %c0_330 = arith.constant 0 : index
    %c0_331 = arith.constant 0 : index
    %c0_332 = arith.constant 0 : index
    %414 = vector.load %arg19[%c0_330, %c0_331, %c0_332] : memref<1x1x32xf32, #tpu.memory_space<vmem>>, vector<1x1x32xf32>
    %415 = vector.shape_cast %414 : vector<1x1x32xf32> to vector<1x32xf32>
    %416 = vector.broadcast %415 : vector<1x32xf32> to vector<8x32xf32>
    %417 = arith.addf %413, %416 : vector<8x32xf32>
    %418 = arith.addf %373, %417 : vector<8x32xf32>
    %c0_333 = arith.constant 0 : index
    %c0_334 = arith.constant 0 : index
    %419 = vector.load %arg23[%c0_333, %c0_334] : memref<8x32xf32, #tpu.memory_space<vmem>>, vector<8x32xf32>
    tpu.vector_store %arg23[%c0_333, %c0_334], %418 {strides = array<i32>} : memref<8x32xf32, #tpu.memory_space<vmem>>, vector<8x32xf32>,
    %c1_i32 = arith.constant 1 : i32
    %420 = arith.cmpi eq, %arg1, %c1_i32 : i32
    %421 = arith.extui %420 : i1 to i32
    %c0_i32_335 = arith.constant 0 : i32
    %422 = arith.cmpi ne, %421, %c0_i32_335 : i32
    scf.if %422 {
      %c0_336 = arith.constant 0 : index
      %c0_337 = arith.constant 0 : index
      %423 = vector.load %arg20[%c0_336, %c0_337] : memref<1x32xf32, #tpu.memory_space<vmem>>, vector<1x32xf32>
      %c0_338 = arith.constant 0 : index
      %c0_339 = arith.constant 0 : index
      %424 = vector.load %arg21[%c0_338, %c0_339] : memref<1x32xf32, #tpu.memory_space<vmem>>, vector<1x32xf32>
      %cst_340 = arith.constant dense<0.000000e+00> : vector<8xf32>
      %425 = vector.multi_reduction <add>, %418, %cst_340 [1] : vector<8x32xf32> to vector<8xf32>
      %426 = vector.shape_cast %425 : vector<8xf32> to vector<8x1xf32>
      %cst_341 = arith.constant 3.200000e+01 : f32
      %427 = vector.broadcast %cst_341 : f32 to vector<8x1xf32>
      %428 = arith.divf %426, %427 : vector<8x1xf32>
      %429 = vector.broadcast %428 : vector<8x1xf32> to vector<8x32xf32>
      %430 = arith.subf %418, %429 : vector<8x32xf32>
      %431 = arith.mulf %430, %430 : vector<8x32xf32>
      %cst_342 = arith.constant dense<0.000000e+00> : vector<8xf32>
      %432 = vector.multi_reduction <add>, %431, %cst_342 [1] : vector<8x32xf32> to vector<8xf32>
      %433 = vector.shape_cast %432 : vector<8xf32> to vector<8x1xf32>
      %cst_343 = arith.constant 3.200000e+01 : f32
      %434 = vector.broadcast %cst_343 : f32 to vector<8x1xf32>
      %435 = arith.divf %433, %434 : vector<8x1xf32>
      %436 = vector.broadcast %428 : vector<8x1xf32> to vector<8x32xf32>
      %437 = arith.subf %418, %436 : vector<8x32xf32>
      %438 = vector.broadcast %423 : vector<1x32xf32> to vector<8x32xf32>
      %439 = arith.mulf %438, %437 : vector<8x32xf32>
      %cst_344 = arith.constant 9.99999997E-7 : f32
      %440 = vector.broadcast %cst_344 : f32 to vector<8x1xf32>
      %441 = arith.addf %435, %440 : vector<8x1xf32>
      %442 = math.rsqrt %441 : vector<8x1xf32>
      %443 = vector.broadcast %442 : vector<8x1xf32> to vector<8x32xf32>
      %444 = arith.mulf %439, %443 : vector<8x32xf32>
      %445 = vector.broadcast %424 : vector<1x32xf32> to vector<8x32xf32>
      %446 = arith.addf %444, %445 : vector<8x32xf32>
      %c0_345 = arith.constant 0 : index
      %c0_346 = arith.constant 0 : index
      %c0_347 = arith.constant 0 : index
      %447 = vector.load %arg22[%c0_345, %c0_346, %c0_347] : memref<1x8x32xf32, #tpu.memory_space<vmem>>, vector<1x8x32xf32>
      %448 = vector.shape_cast %447 : vector<1x8x32xf32> to vector<8x32xf32>
      %449 = vector.shape_cast %446 : vector<8x32xf32> to vector<1x8x32xf32>
      tpu.vector_store %arg22[%c0_345, %c0_346, %c0_347], %449 {strides = array<i32>} : memref<1x8x32xf32, #tpu.memory_space<vmem>>, vector<1x8x32xf32>,
    } else {
    }
    return
  }
  func.func @transform_0(%arg0: i32, %arg1: i32) -> (i32, i32, i32) {
    %c0_i32 = arith.constant 0 : i32
    %c0_i32_0 = arith.constant 0 : i32
    %c0_i32_1 = arith.constant 0 : i32
    return %arg0, %c0_i32, %c0_i32_0 : i32, i32, i32
  }
  func.func @transform_1(%arg0: i32, %arg1: i32) -> (i32, i32) {
    %c0_i32 = arith.constant 0 : i32
    %c0_i32_0 = arith.constant 0 : i32
    %c0_i32_1 = arith.constant 0 : i32
    return %c0_i32, %c0_i32_0 : i32, i32
  }
  func.func @transform_2(%arg0: i32, %arg1: i32) -> (i32, i32, i32) {
    %c0_i32 = arith.constant 0 : i32
    %c0_i32_0 = arith.constant 0 : i32
    %c0_i32_1 = arith.constant 0 : i32
    return %arg1, %c0_i32, %c0_i32_0 : i32, i32, i32
  }
  func.func @transform_3(%arg0: i32, %arg1: i32) -> (i32, i32, i32) {
    %c0_i32 = arith.constant 0 : i32
    %c0_i32_0 = arith.constant 0 : i32
    %c0_i32_1 = arith.constant 0 : i32
    return %arg1, %c0_i32, %c0_i32_0 : i32, i32, i32
  }
  func.func @transform_4(%arg0: i32, %arg1: i32) -> (i32, i32, i32, i32) {
    %c0_i32 = arith.constant 0 : i32
    %c0_i32_0 = arith.constant 0 : i32
    %c0_i32_1 = arith.constant 0 : i32
    %c0_i32_2 = arith.constant 0 : i32
    return %arg1, %c0_i32, %c0_i32_0, %c0_i32_1 : i32, i32, i32, i32
  }
  func.func @transform_5(%arg0: i32, %arg1: i32) -> (i32, i32, i32, i32) {
    %c0_i32 = arith.constant 0 : i32
    %c0_i32_0 = arith.constant 0 : i32
    %c0_i32_1 = arith.constant 0 : i32
    %c0_i32_2 = arith.constant 0 : i32
    return %arg1, %c0_i32, %c0_i32_0, %c0_i32_1 : i32, i32, i32, i32
  }
  func.func @transform_6(%arg0: i32, %arg1: i32) -> (i32, i32, i32, i32) {
    %c0_i32 = arith.constant 0 : i32
    %c0_i32_0 = arith.constant 0 : i32
    %c0_i32_1 = arith.constant 0 : i32
    %c0_i32_2 = arith.constant 0 : i32
    return %arg1, %c0_i32, %c0_i32_0, %c0_i32_1 : i32, i32, i32, i32
  }
  func.func @transform_7(%arg0: i32, %arg1: i32) -> (i32, i32, i32, i32) {
    %c0_i32 = arith.constant 0 : i32
    %c0_i32_0 = arith.constant 0 : i32
    %c0_i32_1 = arith.constant 0 : i32
    %c0_i32_2 = arith.constant 0 : i32
    return %arg1, %c0_i32, %c0_i32_0, %c0_i32_1 : i32, i32, i32, i32
  }
  func.func @transform_8(%arg0: i32, %arg1: i32) -> (i32, i32, i32, i32) {
    %c0_i32 = arith.constant 0 : i32
    %c0_i32_0 = arith.constant 0 : i32
    %c0_i32_1 = arith.constant 0 : i32
    %c0_i32_2 = arith.constant 0 : i32
    return %arg1, %c0_i32, %c0_i32_0, %c0_i32_1 : i32, i32, i32, i32
  }
  func.func @transform_9(%arg0: i32, %arg1: i32) -> (i32, i32, i32, i32) {
    %c0_i32 = arith.constant 0 : i32
    %c0_i32_0 = arith.constant 0 : i32
    %c0_i32_1 = arith.constant 0 : i32
    %c0_i32_2 = arith.constant 0 : i32
    return %arg1, %c0_i32, %c0_i32_0, %c0_i32_1 : i32, i32, i32, i32
  }
  func.func @transform_10(%arg0: i32, %arg1: i32) -> (i32, i32, i32, i32) {
    %c0_i32 = arith.constant 0 : i32
    %c0_i32_0 = arith.constant 0 : i32
    %c0_i32_1 = arith.constant 0 : i32
    %c0_i32_2 = arith.constant 0 : i32
    return %arg1, %c0_i32, %c0_i32_0, %c0_i32_1 : i32, i32, i32, i32
  }
  func.func @transform_11(%arg0: i32, %arg1: i32) -> (i32, i32, i32) {
    %c0_i32 = arith.constant 0 : i32
    %c0_i32_0 = arith.constant 0 : i32
    %c0_i32_1 = arith.constant 0 : i32
    return %arg1, %c0_i32, %c0_i32_0 : i32, i32, i32
  }
  func.func @transform_12(%arg0: i32, %arg1: i32) -> (i32, i32, i32) {
    %c0_i32 = arith.constant 0 : i32
    %c0_i32_0 = arith.constant 0 : i32
    %c0_i32_1 = arith.constant 0 : i32
    return %arg1, %c0_i32, %c0_i32_0 : i32, i32, i32
  }
  func.func @transform_13(%arg0: i32, %arg1: i32) -> (i32, i32, i32) {
    %c0_i32 = arith.constant 0 : i32
    %c0_i32_0 = arith.constant 0 : i32
    %c0_i32_1 = arith.constant 0 : i32
    return %arg1, %c0_i32, %c0_i32_0 : i32, i32, i32
  }
  func.func @transform_14(%arg0: i32, %arg1: i32) -> (i32, i32, i32) {
    %c0_i32 = arith.constant 0 : i32
    %c0_i32_0 = arith.constant 0 : i32
    %c0_i32_1 = arith.constant 0 : i32
    return %arg1, %c0_i32, %c0_i32_0 : i32, i32, i32
  }
  func.func @transform_15(%arg0: i32, %arg1: i32) -> (i32, i32, i32) {
    %c0_i32 = arith.constant 0 : i32
    %c0_i32_0 = arith.constant 0 : i32
    %c0_i32_1 = arith.constant 0 : i32
    return %arg1, %c0_i32, %c0_i32_0 : i32, i32, i32
  }
  func.func @transform_16(%arg0: i32, %arg1: i32) -> (i32, i32, i32) {
    %c0_i32 = arith.constant 0 : i32
    %c0_i32_0 = arith.constant 0 : i32
    %c0_i32_1 = arith.constant 0 : i32
    return %arg1, %c0_i32, %c0_i32_0 : i32, i32, i32
  }
  func.func @transform_17(%arg0: i32, %arg1: i32) -> (i32, i32, i32) {
    %c0_i32 = arith.constant 0 : i32
    %c0_i32_0 = arith.constant 0 : i32
    %c0_i32_1 = arith.constant 0 : i32
    return %arg1, %c0_i32, %c0_i32_0 : i32, i32, i32
  }
  func.func @transform_18(%arg0: i32, %arg1: i32) -> (i32, i32) {
    %c0_i32 = arith.constant 0 : i32
    %c0_i32_0 = arith.constant 0 : i32
    %c0_i32_1 = arith.constant 0 : i32
    return %c0_i32, %c0_i32_0 : i32, i32
  }
  func.func @transform_19(%arg0: i32, %arg1: i32) -> (i32, i32) {
    %c0_i32 = arith.constant 0 : i32
    %c0_i32_0 = arith.constant 0 : i32
    %c0_i32_1 = arith.constant 0 : i32
    return %c0_i32, %c0_i32_0 : i32, i32
  }
  func.func @transform_20(%arg0: i32, %arg1: i32) -> (i32, i32, i32) {
    %c0_i32 = arith.constant 0 : i32
    %c0_i32_0 = arith.constant 0 : i32
    %c0_i32_1 = arith.constant 0 : i32
    return %arg0, %c0_i32, %c0_i32_0 : i32, i32, i32
  }
}

</mosaic_0001>

<bundles_post_ra>
// kernel: tpu_custom_call.1
= control target key start
LH: loop header
LB: loop body
LE: loop exit
PB: predicated region body
PF: predicated region fallthrough
CT: control target
= control target key end

     0   :  { %s6482_s0 = inlined_call_operand.vmem [shape: f32[2,8,32], index: 0, kind: input, shape index: {}]   ;;  %s6483_s1 = inlined_call_operand.vmem [shape: f32[8,8], index: 1, kind: input, shape index: {}]   ;;  %s6484_s2 = inlined_call_operand.vmem [shape: f32[2,1,32], index: 2, kind: input, shape index: {}]   ;;  %s6485_s3 = inlined_call_operand.vmem [shape: f32[2,1,32], index: 3, kind: input, shape index: {}]   ;;  %s6486_s4 = inlined_call_operand.vmem [shape: bf16[2,8,32,4], index: 4, kind: input, shape index: {}]   ;;  %s6487_s5 = inlined_call_operand.vmem [shape: f32[2,8,1,4], index: 5, kind: input, shape index: {}]   ;;  %s6488_s6 = inlined_call_operand.vmem [shape: bf16[2,8,32,4], index: 6, kind: input, shape index: {}]   ;;  %s6489_s7 = inlined_call_operand.vmem [shape: f32[2,8,1,4], index: 7, kind: input, shape index: {}]   ;;  %s6490_s8 = inlined_call_operand.vmem [shape: bf16[2,8,32,4], index: 8, kind: input, shape index: {}]   ;;  %s6491_s9 = inlined_call_operand.vmem [shape: f32[2,8,1,4], index: 9, kind: input, shape index: {}]   ;;  %s6492_s10 = inlined_call_operand.vmem [shape: bf16[2,8,4,32], index: 10, kind: input, shape index: {}]   ;;  %s6493_s11 = inlined_call_operand.vmem [shape: f32[2,1,32], index: 11, kind: input, shape index: {}]   ;;  %s6494_s12 = inlined_call_operand.vmem [shape: f32[2,1,32], index: 12, kind: input, shape index: {}]   ;;  %s6495_s13 = inlined_call_operand.vmem [shape: f32[2,1,32], index: 13, kind: input, shape index: {}]   ;;  %s6496_s14 = inlined_call_operand.vmem [shape: bf16[2,32,64], index: 14, kind: input, shape index: {}]   ;;  %s6497_s15 = inlined_call_operand.vmem [shape: f32[2,1,64], index: 15, kind: input, shape index: {}]   ;;  %s6498_s16 = inlined_call_operand.vmem [shape: bf16[2,64,32], index: 16, kind: input, shape index: {}]   ;;  %s6499_s17 = inlined_call_operand.vmem [shape: f32[2,1,32], index: 17, kind: input, shape index: {}]   ;;  %s6500_s18 = inlined_call_operand.vmem [shape: f32[1,32], index: 18, kind: input, shape index: {}]   ;;  %s6501_s19 = inlined_call_operand.vmem [shape: f32[1,32], index: 19, kind: input, shape index: {}]   ;;  %s6502_s20 = inlined_call_operand.hbm [shape: f32[2,8,32], index: 20, kind: output, shape index: {}]  }
   0x1   :  { %6520 = sst [smem:[#allocation20_spill]] %s6482_s0 }
   0x2   :  { %6521 = sst [smem:[#allocation21_spill]] %s6483_s1 }
   0x3   :  { %6522 = sst [smem:[#allocation22_spill]] %s6484_s2 }
   0x4   :  { %6523 = sst [smem:[#allocation23_spill]] %s6485_s3 }
   0x5   :  { %6524 = sst [smem:[#allocation24_spill]] %s6486_s4 }
   0x6   :  { %6525 = sst [smem:[#allocation25_spill]] %s6487_s5 }
   0x7   :  { %6526 = sst [smem:[#allocation26_spill]] %s6488_s6 }
   0x8   :  { %6527 = sst [smem:[#allocation27_spill]] %s6489_s7 }
   0x9   :  { %6528 = sst [smem:[#allocation28_spill]] %s6490_s8 }
   0xa   :  { %6529 = sst [smem:[#allocation29_spill]] %s6491_s9 }
   0xb   :  { %6530 = sst [smem:[#allocation30_spill]] %s6492_s10 }
   0xc   :  { %6531 = sst [smem:[#allocation31_spill]] %s6493_s11 }
   0xd   :  { %6532 = sst [smem:[#allocation32_spill]] %s6494_s12 }
   0xe   :  { %6533 = sst [smem:[#allocation33_spill]] %s6498_s16 }
   0xf   :  { %6534 = sst [smem:[#allocation34_spill]] %s6499_s17 }
  0x10   :  { %6535 = sst [smem:[#allocation35_spill]] %s6500_s18 }
  0x11   :  { %6536 = sst [smem:[#allocation36_spill]] %s6501_s19 }
  0x12   :  { %6537 = sst [smem:[#allocation37_spill]] %s6502_s20 }
  0x13   :  { %25 = vsyncpa [#allocation4], 0 }
  0x14   :  { %27 = vsyncpa [#allocation4 + $0x1], 0  ;;  %s5812_s1 = smov 0   ;;  %s5814_s22 = smov 0  }
  0x15   :  { %s5816_s23 = smov 0   ;;  %s5818_s24 = smov 0  }
  0x16   :  { %s5820_s2 = smov 0   ;;  %s5822_s25 = smov 0  }
  0x17   :  { %s5824_s3 = smov 0   ;;  %s5826_s26 = smov 0  }
  0x18 LB: > { %6538 = sst [smem:[#allocation6_spill]] %s5674_s1  ;;  %s4682_s27 = sadd.s32 4294967295, %s5702_s26   ;;  %s5702_s26 = sphi %s5826_s26, %s33_s26   ;;  %s5698_s3 = sphi %s5824_s3, %s6597_s3   ;;  %s5694_s25 = sphi %s5822_s25, %s6596_s25   ;;  %s5690_s2 = sphi %s5820_s2, %s6595_s2   ;;  %s5686_s24 = sphi %s5818_s24, %s6594_s24   ;;  %s5682_s23 = sphi %s5816_s23, %s6593_s23   ;;  %s5678_s22 = sphi %s5814_s22, %s6592_s22   ;;  %s5674_s1 = sphi %s5812_s1, %s6591_s1  }
  0x19   : > { %6539 = sst [smem:[#allocation7_spill]] %s5678_s22  ;;  %s4683_s28 = sadd.s32 4294967294, %s5702_s26  }
  0x1a   : > { %6540 = sst [smem:[#allocation8_spill]] %s5682_s23  ;;  %s42_s4 = sadd.s32 1, %s5694_s25 }
  0x1b   : > { %6541 = sst [smem:[#allocation9_spill]] %s5686_s24  ;;  %p43_p0 = scmp.ge.s32.totalorder %s42_s4, 2 }
  0x1c   : > { %6542 = sst [smem:[#allocation10_spill]] %s5690_s2  ;;  %s45_s29 = sadd.s32 1, %s5698_s3 }
  0x1d   : > { %6543 = sst [smem:[#allocation11_spill]] %s5694_s25  ;;  %p567_p1 = scmp.ne.s32.totalorder %s5682_s23, %s5678_s22 }
  0x1e   : > { %6544 = sst [smem:[#allocation12_spill]] %s5698_s3  ;;  %p568_p2 = scmp.eq.s32.totalorder %s4682_s27, 3 }
  0x1f   : > { %6545 = sst [smem:[#allocation13_spill]] %s5702_s26  ;;  %s6599_s4 = smov (%p43_p0, %s42_s4), 0 }
  0x20   : > { %6546 = sst [smem:[#allocation14_spill]] %s6599_s4  ;;  %s6601_s29 = smov (!%p43_p0, %s45_s29), %s5698_s3 }
  0x21   : > { %p5861_p3 = por %p568_p2, %p567_p1  ;;  %p573_p4 = scmp.ne.s32.totalorder %s5678_s22, %s5674_s1 }
  0x22   : > { %p47_p5 = scmp.ge.s32.totalorder %s6601_s29, 2  ;;  %p574_p6 = scmp.eq.s32.totalorder %s4683_s28, 3 }
  0x23   : > { %s6547_s30 = scalar_select %p5861_p3, 1, 0 }
  0x24   : > { %p4686_p7 = scmp.ge.s32.totalorder %s5702_s26, 1  ;;  %p719_p8 = scmp.lt.s32.totalorder %s5702_s26, 5 }
  0x25   : > { %6548 = sst [smem:[#allocation15_spill]] %s6547_s30  ;;  %s6603_s29 = smov (%p47_p5, %s6601_s29), 0 }
  0x26   : > { %6549 = sst [smem:[#allocation16_spill]] %s6603_s29  ;;  %p5871_p9 = por %p574_p6, %p573_p4 }
  0x27   : > { %p720_p10 = pnand %p4686_p7, %p719_p8  ;;  %s554_s21 = ssub.s32 %s5698_s3, %s6603_s29 }
  0x28   : > { %s6550_s0 = scalar_select %p5871_p9, 1, 0 }
  0x29   : > { %s557_s27 = sadd.s32 1, %s5682_s23  ;;  %p555_p11 = scmp.eq.s32.totalorder %s554_s21, 0 }
  0x2a   : > { %6551 = sst [smem:[#allocation17_spill]] %s6550_s0  ;;  %723 = sbr.rel (%p720_p10) target bundleno = 9222 (0x2406), region = 100 }
  0x2b   : > { %s5879_s4 = scalar_select %p555_p11, %s5682_s23, %s557_s27  }
  0x2d   : > { %6552 = sst [smem:[#allocation18_spill]] %s5879_s4 }
  0x31   : > { %s6510_s28 = sand.u32 1, %s5678_s22   ;;  %p839_p12 = scmp.lt.s32.totalorder %s5690_s2, 1 }
  0x32   : > { %s5885_s25 = sshll.u32 %s6510_s28, 3  ;;  %p843_p13 = scmp.lt.s32.totalorder %s5686_s24, 1 }
  0x33   : > { %s840_s0 = scalar_select %p839_p12, %s5690_s2, 1 }
  0x34   : > { %s5890_s1 = scalar_select %p843_p13, %s5686_s24, 1 }
  0x35   : > { %s4688_s21 = sshll.u32 %s840_s0, 3  ;;  %s6553_s3 = sld [smem:[#allocation20_spill]] }
  0x36   : > { %s4967_s18 = sshll.u32 %s5890_s1, 7  ;;  %s6556_s17 = sld [smem:[#allocation24_spill]] }
  0x37   : > { %s4691_s29 = sshll.u32 %s5890_s1, 3  ;;  %s6557_s5 = sld [smem:[#allocation25_spill]] }
  0x38   : > { %s6559_s6 = sld [smem:[#allocation26_spill]]  ;;  %s6560_s7 = sld [smem:[#allocation27_spill]] }
  0x39   : > { %s6561_s8 = sld [smem:[#allocation28_spill]]  ;;  %s6562_s9 = sld [smem:[#allocation29_spill]] }
  0x3a   : > { %s4970_s20 = sshll.u32 %s5890_s1, 4  ;;  %s6563_s10 = sld [smem:[#allocation30_spill]] }
  0x3b   : > { %s842_s4 = scalar_lea.vmem %s6553_s3, %s4688_s21  ;;  %s889_s19 = scalar_lea.vmem %s6495_s13, %s5890_s1 }
  0x3c   : > { %s5907_s0 = scalar_lea.vmem %s6556_s17, %s4967_s18  ;;  %s6566_s30 = sld [smem:[#allocation34_spill]] }
  0x3d   : > { %s5913_s23 = scalar_lea.vmem %s6557_s5, %s4691_s29  ;;  %s838_s16 = scalar_lea.vmem [#allocation3], %s5885_s25 }
  0x3e   : > { %6558 = sst [smem:[#allocation19_spill]] %s5913_s23  ;;  %s5918_s22 = scalar_lea.vmem %s6559_s6, %s4967_s18 }
  0x3f   : > { %s5923_s21 = scalar_lea.vmem %s6560_s7, %s4691_s29  ;;  %s5928_s24 = scalar_lea.vmem %s6561_s8, %s4967_s18 }
  0x40   : > { %s5933_s3 = scalar_lea.vmem %s6562_s9, %s4691_s29  ;;  %s5939_s28 = scalar_lea.vmem %s6563_s10, %s4970_s20 }
  0x41   : > { %s5956_s8 = scalar_lea.vmem %s6496_s14, %s4970_s20  ;;  %s897_s9 = scalar_lea.vmem %s6497_s15, %s5890_s1 }
  0x42   : > { %s4972_s10 = sshll.u32 %s5890_s1, 5  ;;  %s905_s11 = scalar_lea.vmem %s6566_s30, %s5890_s1 }
  0x43   : > { %s6567_s18 = sld [smem:[#allocation33_spill]]  ;;  %s6568_s17 = sld [smem:[#allocation9_spill]] }
  0x49   : > { %s5970_s12 = scalar_lea.vmem %s6567_s18, %s4972_s10  ;;  %p4704_p0 = scmp.ne.s32.totalorder %s6568_s17, 0 }
  0x4a   : > { %v911_v0 = vld [vmem:[%s842_s4] sm:$0xff] (!%p4704_p0)  ;;  %vm912_vm0 = vcmask (!%p4704_p0), 261120  }
  0x4b   : > { %910 = sbr.rel (%p4704_p0) target bundleno = 82 (0x52), region = 104  ;;  %913 = vst.msk [vmem:[#allocation2] sm:$0xff] (!%p4704_p0), %vm912_vm0, %v911_v0 }
  0x52 PF: > { %v914_v1 = vld [vmem:[#allocation2] sm:$0xff]  ;;  %vm918_vm1 = vcmask 261120   ;;  %v5704_v10 = vmov 0.0   ;;  %v5516_v11 = vld [vmem:[%s5907_s0 + $0x8] sm:$0xff]   ;;  %vm5705_vm2 = vmmov 0   ;;  %s6569_s4 = sld [smem:[#allocation22_spill]] }
  0x53   : > { %v919_v2 = vsel %vm918_vm1, %v914_v1, 0.0  ;;  %v5514_v8 = vld [vmem:[%s5907_s0] sm:$0xff]   ;;  %5101 = vmatprep.subr.bf16.mxu0 %v5704_v10  ;;  %5109 = vmatprep.subr.bf16.mxu1 %v5704_v10  ;;  %v5517_v12 = vld [vmem:[%s5918_s22 + $0x8] sm:$0xff]   ;;  %s6571_s27 = sld [smem:[#allocation23_spill]]  ;;  %v5520_v25 = vld [vmem:[%s5907_s0 + $0x10] sm:$0xff]   ;;  %s6573_s26 = sld [smem:[#allocation19_spill]] }
  0x54   : > { %920 = vadd.xlane.f32.xlu0 %v919_v2  ;;  %v5515_v9 = vld [vmem:[%s5918_s22] sm:$0xff]   ;;  %5102 = vmatpush3.bf16.msra.mxu0 %v5514_v8  ;;  %v5519_v24 = vld [vmem:[%s5928_s24 + $0x8] sm:$0xff]   ;;  %v5521_v26 = vld [vmem:[%s5907_s0 + $0x18] sm:$0xff]   ;;  %vm1140_vm3 = vcmask 31744   ;;  %s6574_s7 = sld [smem:[#allocation21_spill]]  ;;  %vm1219_vm4 = vcmask 64512  }
  0x55   : > { %5110 = vmatpush3.bf16.msra.mxu1 %v5515_v9  ;;  %5103 = vmatprep.subr.bf16.mxu0 %v5704_v10  ;;  %v5518_v22 = vld [vmem:[%s5928_s24] sm:$0xff]   ;;  %v5522_v27 = vld [vmem:[%s5928_s24 + $0x10] sm:$0xff]   ;;  %v5523_v28 = vld [vmem:[%s5928_s24 + $0x18] sm:$0xff]   ;;  %vm1669_vm5 = vcmask 1041408   ;;  %s6577_s17 = sld [smem:[#allocation32_spill]]  ;;  %vm4347_vm6 = vcmask 523264  }
  0x56   : > { %5111 = vmatprep.subr.bf16.mxu1 %v5704_v10  ;;  %5105 = vmatprep.mubr.msk.bf16.mxu0 %vm5705_vm2, %v5704_v10  ;;  %v4711_v29 = vld [vmem:[%s5923_s21] ss:$0 sm:$0xff]  ;;  %v4745_v51 = vld [vmem:[%s5933_s3 + $0x1] ss:$0 sm:$0xff]  ;;  %v5525_v8 = vld [vmem:[%s5918_s22 + $0x18] sm:$0xff]  }
  0x57   : > { %5113 = vmatprep.mubr.msk.bf16.mxu1 %vm5705_vm2, %v5704_v10  ;;  %v4715_v41 = vld [vmem:[%s5933_s3] ss:$0 sm:$0xff] }
  0x58   : > { %5104 = vmatpush3.bf16.msra.mxu0 %v5516_v11  ;;  %s6570_s30 = scalar_lea.vmem %s6569_s4, %s5890_s1 }
  0x59   : > { %5112 = vmatpush3.bf16.msra.mxu1 %v5517_v12  ;;  %5117 = vmatprep.subr.bf16.mxu0 %v5704_v10  ;;  %v4705_v16 = vld [vmem:[%s6570_s30] ss:$0 sm:$0xff]  ;;  %s6572_s5 = scalar_lea.vmem %s6571_s27, %s5890_s1  ;;  %v4736_v12 = vld [vmem:[%s5923_s21 + $0x1] ss:$0 sm:$0xff] }
  0x5a   : > { %5125 = vmatprep.subr.mxu1 %v5704_v10  ;;  %v4706_v19 = vld [vmem:[%s6572_s5] ss:$0 sm:$0xff] }
  0x5b   : > { %v4707_v32 = vld [vmem:[%s6573_s26] ss:$0 sm:$0xff]  ;;  %s6578_s10 = scalar_lea.vmem %s6577_s17, %s5890_s1 }
  0x5c   : > { %v6048_v58 = vld [vmem:[%s6574_s7] sm:$0xff] }
  0xe1   : > { %v921_v3 = vpop.xlane.xlu0 %920 }
  0xe2   : > { %v923_v4 = vmul.f32 0.03125, %v921_v3 }
  0xe4   : > { %v924_v5 = vsub.f32 %v914_v1, %v923_v4 }
  0xe6   : > { %v925_v6 = vmul.f32 %v924_v5, %v924_v5  ;;  %v936_v17 = vmul.f32 %v4705_v16, %v924_v5 }
  0xe8   : > { %v926_v7 = vsel %vm918_vm1, %v925_v6, 0.0  ;;  %v5524_v6 = vld [vmem:[%s5918_s22 + $0x10] sm:$0xff]  }
  0xe9   : > { %927 = vadd.xlane.f32.xlu0 %v926_v7 }
 0x176   : > { %v928_v13 = vpop.xlane.xlu0 %927 }
 0x177   : > { %v929_v14 = vmul.f32 0.03125, %v928_v13 }
 0x179   : > { %v937_v15 = vadd.f32 1e-06, %v929_v14  ;;  %v4727_v14 = vld [vmem:[%s6573_s26 + $0x1] ss:$0 sm:$0xff] }
 0x17b   : > { %5568 = vrsqrt.f32 %v937_v15 }
 0x185   : > { %v5569_v18 = vpop.eup %5568 }
 0x186   : > { %v939_v20 = vmul.f32 %v5569_v18, %v936_v17 }
 0x188   : > { %v946_v21 = vadd.f32 %v4706_v19, %v939_v20 }
 0x18a   : > { %v6001_v23 = vpack.c.bf16 %v946_v21, %v946_v21 }
 0x18c   : > { %5106 = vmatmul.mubr.msk.bf16.vlgmr.msra.gmra.mrb[0].mxu0 %vm918_vm1, %v6001_v23  ;;  %5114 = vmatmul.mubr.msk.bf16.vlgmr.msra.gmra.mrb[0].mxu1 %vm918_vm1, %v6001_v23 }
 0x18d   : > { %5118 = vmatpush3.bf16.msra.mxu0 %v5518_v22  ;;  %5121 = vmatprep.mubr.msk.bf16.mxu0 %vm5705_vm2, %v5704_v10 }
 0x18e   : > { %5119 = vmatprep.subr.bf16.mxu0 %v5704_v10  ;;  %5127 = vmatprep.mubr.msk.f32.mxu1 %vm5705_vm2, %v5704_v10 }
 0x191   : > { %5120 = vmatpush3.bf16.msra.mxu0 %v5519_v24 }
 0x192   : > { %5135 = vmatprep.subr.bf16.mxu0 %v5704_v10 }
 0x194   : > { %5122 = vmatmul.mubr.msk.bf16.vlgmr.msra.gmra.mrb[4].mxu0 %vm918_vm1, %v6001_v23 }
 0x195   : > { %5136 = vmatpush3.bf16.msra.mxu0 %v5520_v25  ;;  %5139 = vmatprep.mubr.msk.bf16.mxu0 %vm5705_vm2, %v5704_v10 }
 0x196   : > { %5137 = vmatprep.subr.bf16.mxu0 %v5704_v10 }
 0x199   : > { %5138 = vmatpush3.bf16.msra.mxu0 %v5521_v26 }
 0x19a   : > { %5151 = vmatprep.subr.bf16.mxu0 %v5704_v10 }
 0x19c   : > { %5140 = vmatmul.mubr.msk.bf16.vlgmr.msra.gmra.mrb[8].mxu0 %vm918_vm1, %v6001_v23 }
 0x19d   : > { %5152 = vmatpush3.bf16.msra.mxu0 %v5522_v27  ;;  %5155 = vmatprep.mubr.msk.bf16.mxu0 %vm5705_vm2, %v5704_v10 }
 0x19e   : > { %5153 = vmatprep.subr.bf16.mxu0 %v5704_v10 }
 0x1a1   : > { %5154 = vmatpush3.bf16.msra.mxu0 %v5523_v28 }
 0x1a2   : > { %5164 = vmatprep.subr.mxu0 %v5704_v10 }
 0x1a4   : > { %5156 = vmatmul.mubr.msk.bf16.vlgmr.msra.gmra.mrb[12].mxu0 %vm918_vm1, %v6001_v23 }
 0x1a5   : > { %5166 = vmatprep.mubr.msk.f32.mxu0 %vm5705_vm2, %v5704_v10 }
 0x25f   : > { %v1008_v30 = vpop.f32.mrb[0].mxu0  ;;  %v1071_v31 = vpop.f32.mrb[0].mxu1 }
 0x260   : > { %v1072_v33 = vadd.f32 %v4711_v29, %v1071_v31  ;;  %v5107_v34 = vpop.f32.mrb[1].mxu0  ;;  %v5115_v35 = vpop.f32.mrb[1].mxu1  ;;  %v1009_v40 = vadd.f32 %v4707_v32, %v1008_v30  ;;  %v1305_v32 = vld [vmem:[%s5939_s28] sm:$0x3] }
 0x261   : > { %v1011_v36 = vpop.f32.mrb[2].mxu0  ;;  %v1074_v37 = vpop.f32.mrb[2].mxu1  ;;  %v1717_v35 = vsel %vm1669_vm5, %v1305_v32, 0  ;;  %v5537_v32 = vld [vmem:[%s5918_s22 + $0x48] sm:$0xff]  }
 0x262   : > { %v5108_v38 = vpop.f32.mrb[3].mxu0  ;;  %v5116_v39 = vpop.f32.mrb[3].mxu1  ;;  %5126 = vmatpush3.xpose.msk.msra.mxu1 %vm1140_vm3, %v1072_v33  ;;  %v5526_v36 = vld [vmem:[%s5918_s22 + $0x20] sm:$0xff]  }
 0x263   : > { %5130 = vmatprep.subr.mxu1 %v5704_v10  ;;  %v5527_v38 = vld [vmem:[%s5918_s22 + $0x28] sm:$0xff]   ;;  %v4752_v39 = vld [vmem:[%s5939_s28 + $0x2] sm:$0x3] }
 0x265   : > { %5128 = vmatmul.mubr.msk.f32.vlgmr.msra.gmra.mrb[4].mxu1 %vm1140_vm3, %v1009_v40  ;;  %v1671_v40 = vsel %vm1669_vm5, %v4752_v39, 0  ;;  %v5539_v39 = vld [vmem:[%s5918_s22 + $0x38] sm:$0xff]  }
 0x266   : > { %5132 = vmatprep.mubr.msk.f32.mxu1 %vm5705_vm2, %v5704_v10 }
 0x267   : > { %v1134_v42 = vpop.f32.mrb[4].mxu0 }
 0x268   : > { %v1135_v43 = vadd.f32 %v4715_v41, %v1134_v42  ;;  %v5123_v44 = vpop.f32.mrb[5].mxu0  ;;  %v5528_v42 = vld [vmem:[%s5907_s0 + $0x20] sm:$0xff]  }
 0x269   : > { %v1137_v45 = vpop.f32.mrb[6].mxu0 }
 0x26a   : > { %v5124_v46 = vpop.f32.mrb[7].mxu0  ;;  %5131 = vmatpush3.msra.mxu1 %v1135_v43 }
 0x26b   : > { %5143 = vmatprep.subr.bf16.mxu1 %v5704_v10  ;;  %v5529_v46 = vld [vmem:[%s5907_s0 + $0x28] sm:$0xff]  }
 0x26f   : > { %v1365_v47 = vpop.f32.mrb[8].mxu0 }
 0x270   : > { %v5141_v48 = vpop.f32.mrb[9].mxu0  ;;  %v1366_v19 = vadd.f32 %v4727_v14, %v1365_v47 }
 0x271   : > { %v1368_v49 = vpop.f32.mrb[10].mxu0 }
 0x272   : > { %v5142_v50 = vpop.f32.mrb[11].mxu0 }
 0x273   : > { %v5530_v50 = vld [vmem:[%s5928_s24 + $0x20] sm:$0xff]  }
 0x277   : > { %v1495_v52 = vpop.f32.mrb[12].mxu0 }
 0x278   : > { %v1496_v53 = vadd.f32 %v4745_v51, %v1495_v52  ;;  %v5157_v54 = vpop.f32.mrb[13].mxu0  ;;  %v4769_v51 = vld [vmem:[%s5923_s21 + $0x2] ss:$0 sm:$0xff] }
 0x279   : > { %v1498_v55 = vpop.f32.mrb[14].mxu0 }
 0x27a   : > { %v5158_v56 = vpop.f32.mrb[15].mxu0  ;;  %5165 = vmatpush3.msra.mxu0 %v1496_v53  ;;  %v5531_v53 = vld [vmem:[%s5928_s24 + $0x28] sm:$0xff]  }
 0x27b   : > { %5175 = vmatprep.subr.bf16.mxu0 %v5704_v10 }
 0x338   : > { %v1213_v57 = vpop.f32.mrb[4].mxu1 }
 0x339   : > { %v1217_v59 = vmul.f32 0.5, %v1213_v57  ;;  %v5129_v60 = vpop.f32.mrb[5].mxu1 }
 0x33b   : > { %v1218_v61 = vadd.f32 %v1217_v59, %v6048_v58 }
 0x33d   : > { %v1220_v62 = vsel %vm1219_vm4, %v1218_v61, -inf }
 0x33e   : > { %1221 = vmax.xlane.f32.xlu1 %v1220_v62 }
 0x3cb   : > { %v1222_v63 = vpop.xlane.xlu1 %1221 }
 0x3cc   : > { %v1223_v0 = vsub.f32 %v1218_v61, %v1222_v63 }
 0x3ce   : > { %v1224_v1 = vmul.f32 1.442695, %v1223_v0  ;;  %v4760_v0 = vld [vmem:[%s6573_s26 + $0x2] ss:$0 sm:$0xff] }
 0x3d0   : > { %5570 = vpow2.f32 %v1224_v1 }
 0x3da   : > { %v5571_v2 = vpop.eup %5570 }
 0x3db   : > { %v1226_v3 = vsel %vm1219_vm4, %v5571_v2, 0.0 }
 0x3dc   : > { %1227 = vadd.xlane.f32.xlu1 %v1226_v3 }
 0x469   : > { %v1228_v4 = vpop.xlane.xlu1 %1227 }
 0x46a   : > { %5572 = vrcp.f32 %v1228_v4 }
 0x474   : > { %v5573_v5 = vpop.eup %5572 }
 0x475   : > { %v1230_v7 = vmul.f32 %v5573_v5, %v5571_v2 }
 0x477   : > { %5133 = vmatmul.mubr.msk.f32.vlgmr.msra.gmra.mrb[6].mxu1 %vm1219_vm4, %v1230_v7 }
 0x478   : > { %5144 = vmatpush3.bf16.msra.mxu1 %v5524_v6  ;;  %5147 = vmatprep.mubr.msk.bf16.mxu1 %vm5705_vm2, %v5704_v10  ;;  %v4778_v6 = vld [vmem:[%s5933_s3 + $0x2] ss:$0 sm:$0xff] }
 0x479   : > { %5145 = vmatprep.subr.bf16.mxu1 %v5704_v10 }
 0x47c   : > { %5146 = vmatpush3.bf16.msra.mxu1 %v5525_v8 }
 0x47d   : > { %5159 = vmatprep.subr.mxu1 %v5704_v10 }
 0x47f   : > { %5148 = vmatmul.mubr.msk.bf16.vlgmr.msra.gmra.mrb[8].mxu1 %vm918_vm1, %v6001_v23 }
 0x480   : > { %5161 = vmatprep.mubr.msk.f32.mxu1 %vm5705_vm2, %v5704_v10 }
 0x54a   : > { %v1300_v9 = vpop.f32.mrb[6].mxu1 }
 0x54b   : > { %v5134_v11 = vpop.f32.mrb[7].mxu1  ;;  %v1304_v37 = vpack.c.bf16 %v1300_v9, %v1300_v9 }
 0x552   : > { %v1430_v13 = vpop.f32.mrb[8].mxu1 }
 0x553   : > { %v1431_v15 = vadd.f32 %v4736_v12, %v1430_v13  ;;  %v5149_v16 = vpop.f32.mrb[9].mxu1 }
 0x554   : > { %v1433_v17 = vpop.f32.mrb[10].mxu1 }
 0x555   : > { %v5150_v18 = vpop.f32.mrb[11].mxu1  ;;  %5160 = vmatpush3.xpose.msk.msra.mxu1 %vm1140_vm3, %v1431_v15 }
 0x556   : > { %5169 = vmatprep.subr.bf16.mxu1 %v5704_v10 }
 0x558   : > { %5162 = vmatmul.mubr.msk.f32.vlgmr.msra.gmra.mrb[12].mxu1 %vm1140_vm3, %v1366_v19 }
 0x559   : > { %5171 = vmatprep.mubr.msk.bf16.mxu1 %vm5705_vm2, %v5704_v10  ;;  %5170 = vmatpush3.bf16.msra.mxu1 %v1671_v40 }
 0x55a   : > { %5181 = vmatprep.subr.bf16.mxu1 %v5704_v10 }
 0x62b   : > { %v1573_v20 = vpop.f32.mrb[12].mxu1 }
 0x62c   : > { %v1577_v21 = vmul.f32 0.5, %v1573_v20  ;;  %v5163_v22 = vpop.f32.mrb[13].mxu1 }
 0x62e   : > { %v1578_v24 = vadd.f32 %v1577_v21, %v6048_v58 }
 0x630   : > { %v1579_v25 = vsel %vm1219_vm4, %v1578_v24, -inf }
 0x631   : > { %1580 = vmax.xlane.f32.xlu0 %v1579_v25 }
 0x6be   : > { %v1581_v26 = vpop.xlane.xlu0 %1580 }
 0x6bf   : > { %v1582_v27 = vsub.f32 %v1578_v24, %v1581_v26  ;;  %v5532_v26 = vld [vmem:[%s5907_s0 + $0x30] sm:$0xff]  }
 0x6c1   : > { %v1583_v28 = vmul.f32 1.442695, %v1582_v27 }
 0x6c3   : > { %5574 = vpow2.f32 %v1583_v28  ;;  %v5533_v28 = vld [vmem:[%s5907_s0 + $0x38] sm:$0xff]  }
 0x6cd   : > { %v5575_v29 = vpop.eup %5574 }
 0x6ce   : > { %v1585_v30 = vsel %vm1219_vm4, %v5575_v29, 0.0 }
 0x6cf   : > { %1586 = vadd.xlane.f32.xlu1 %v1585_v30  ;;  %v5535_v30 = vld [vmem:[%s5928_s24 + $0x38] sm:$0xff]  }
 0x75c   : > { %v1587_v31 = vpop.xlane.xlu1 %1586 }
 0x75d   : > { %5576 = vrcp.f32 %v1587_v31  ;;  %v5536_v31 = vld [vmem:[%s5918_s22 + $0x40] sm:$0xff]  }
 0x767   : > { %v5577_v33 = vpop.eup %5576 }
 0x768   : > { %v1589_v34 = vmul.f32 %v5577_v33, %v5575_v29  ;;  %v5534_v29 = vld [vmem:[%s5928_s24 + $0x30] sm:$0xff]   ;;  %v4785_v33 = vld [vmem:[%s5939_s28 + $0x4] sm:$0x3] }
 0x76a   : > { %5167 = vmatmul.mubr.msk.f32.vlgmr.msra.gmra.mrb[16].mxu0 %vm1219_vm4, %v1589_v34  ;;  %v2123_v34 = vsel %vm1669_vm5, %v4785_v33, 0 }
 0x76b   : > { %5176 = vmatpush3.bf16.msra.mxu0 %v1717_v35  ;;  %5177 = vmatprep.mubr.msk.bf16.mxu0 %vm5705_vm2, %v5704_v10 }
 0x76c   : > { %5189 = vmatprep.subr.bf16.mxu0 %v5704_v10 }
 0x76e   : > { %5178 = vmatmul.mubr.msk.bf16.vlgmr.msra.gmra.mrb[20].mxu0 %vm1140_vm3, %v1304_v37 }
 0x76f   : > { %5190 = vmatpush3.bf16.msra.mxu0 %v5526_v36  ;;  %5193 = vmatprep.mubr.msk.bf16.mxu0 %vm5705_vm2, %v5704_v10  ;;  %v5538_v36 = vld [vmem:[%s5918_s22 + $0x30] sm:$0xff]  }
 0x770   : > { %5191 = vmatprep.subr.bf16.mxu0 %v5704_v10 }
 0x773   : > { %5192 = vmatpush3.bf16.msra.mxu0 %v5527_v38 }
 0x774   : > { %5205 = vmatprep.subr.mxu0 %v5704_v10 }
 0x776   : > { %5194 = vmatmul.mubr.msk.bf16.vlgmr.msra.gmra.mrb[24].mxu0 %vm918_vm1, %v6001_v23 }
 0x777   : > { %5207 = vmatprep.mubr.msk.f32.mxu0 %vm5705_vm2, %v5704_v10 }
 0x83d   : > { %v1659_v41 = vpop.f32.mrb[16].mxu0 }
 0x83e   : > { %v1663_v43 = vpack.c.bf16 %v1659_v41, %v1659_v41  ;;  %v5168_v44 = vpop.f32.mrb[17].mxu0 }
 0x840   : > { %5172 = vmatmul.mubr.msk.bf16.vlgmr.msra.gmra.mrb[16].mxu1 %vm1140_vm3, %v1663_v43 }
 0x841   : > { %v1753_v45 = vpop.f32.mrb[20].mxu0  ;;  %5182 = vmatpush3.bf16.msra.mxu1 %v5528_v42  ;;  %5185 = vmatprep.mubr.msk.bf16.mxu1 %vm5705_vm2, %v5704_v10 }
 0x842   : > { %v5179_v47 = vpop.f32.mrb[21].mxu0  ;;  %5183 = vmatprep.subr.bf16.mxu1 %v5704_v10 }
 0x843   : > { %v1756_v48 = vpop.f32.mrb[22].mxu0 }
 0x844   : > { %v5180_v49 = vpop.f32.mrb[23].mxu0  ;;  %v4833_v48 = vld [vmem:[%s5923_s21 + $0x4] ss:$0 sm:$0xff] }
 0x845   : > { %5184 = vmatpush3.bf16.msra.mxu1 %v5529_v46 }
 0x846   : > { %5197 = vmatprep.subr.bf16.mxu1 %v5704_v10 }
 0x848   : > { %5186 = vmatmul.mubr.msk.bf16.vlgmr.msra.gmra.mrb[20].mxu1 %vm918_vm1, %v6001_v23 }
 0x849   : > { %v1883_v52 = vpop.f32.mrb[24].mxu0  ;;  %5198 = vmatpush3.bf16.msra.mxu1 %v5530_v50  ;;  %5201 = vmatprep.mubr.msk.bf16.mxu1 %vm5705_vm2, %v5704_v10 }
 0x84a   : > { %v1884_v54 = vadd.f32 %v4769_v51, %v1883_v52  ;;  %v5195_v55 = vpop.f32.mrb[25].mxu0  ;;  %5199 = vmatprep.subr.bf16.mxu1 %v5704_v10 }
 0x84b   : > { %v1886_v56 = vpop.f32.mrb[26].mxu0 }
 0x84c   : > { %v5196_v57 = vpop.f32.mrb[27].mxu0  ;;  %5206 = vmatpush3.xpose.msk.msra.mxu0 %vm1140_vm3, %v1884_v54 }
 0x84d   : > { %5200 = vmatpush3.bf16.msra.mxu1 %v5531_v53  ;;  %5210 = vmatprep.subr.mxu0 %v5704_v10 }
 0x84e   : > { %5215 = vmatprep.subr.bf16.mxu1 %v5704_v10 }
 0x850   : > { %5202 = vmatmul.mubr.msk.bf16.vlgmr.msra.gmra.mrb[24].mxu1 %vm918_vm1, %v6001_v23 }
 0x851   : > { %5217 = vmatprep.mubr.msk.bf16.mxu1 %vm5705_vm2, %v5704_v10  ;;  %5216 = vmatpush3.bf16.msra.mxu1 %v2123_v34 }
 0x852   : > { %5229 = vmatprep.subr.bf16.mxu1 %v5704_v10 }
 0x913   : > { %v1707_v59 = vpop.f32.mrb[16].mxu1 }
 0x914   : > { %v6116_v60 = vadd.f32 %v1753_v45, %v1707_v59  ;;  %v5173_v61 = vpop.f32.mrb[17].mxu1 }
 0x915   : > { %v1710_v62 = vpop.f32.mrb[18].mxu1  ;;  %v4801_v61 = vld [vmem:[%s5923_s21 + $0x3] ss:$0 sm:$0xff] }
 0x916   : > { %v5174_v63 = vpop.f32.mrb[19].mxu1 }
 0x917   : > { %v4792_v63 = vld [vmem:[%s6573_s26 + $0x3] ss:$0 sm:$0xff] }
 0x91b   : > { %v1818_v1 = vpop.f32.mrb[20].mxu1 }
 0x91c   : > { %v1819_v2 = vadd.f32 %v4760_v0, %v1818_v1  ;;  %v5187_v3 = vpop.f32.mrb[21].mxu1 }
 0x91d   : > { %v1821_v4 = vpop.f32.mrb[22].mxu1 }
 0x91e   : > { %v5188_v5 = vpop.f32.mrb[23].mxu1  ;;  %5208 = vmatmul.mubr.msk.f32.vlgmr.msra.gmra.mrb[18].mxu0 %vm1140_vm3, %v1819_v2  ;;  %v4810_v2 = vld [vmem:[%s5933_s3 + $0x3] ss:$0 sm:$0xff] }
 0x91f   : > { %5212 = vmatprep.mubr.msk.f32.mxu0 %vm5705_vm2, %v5704_v10 }
 0x923   : > { %v1948_v7 = vpop.f32.mrb[24].mxu1 }
 0x924   : > { %v1949_v8 = vadd.f32 %v4778_v6, %v1948_v7  ;;  %v5203_v9 = vpop.f32.mrb[25].mxu1 }
 0x925   : > { %v1951_v11 = vpop.f32.mrb[26].mxu1 }
 0x926   : > { %v5204_v12 = vpop.f32.mrb[27].mxu1  ;;  %5211 = vmatpush3.msra.mxu0 %v1949_v8 }
 0x927   : > { %5221 = vmatprep.subr.bf16.mxu0 %v5704_v10 }
 0x9f1   : > { %v2026_v13 = vpop.f32.mrb[18].mxu0 }
 0x9f2   : > { %v2030_v14 = vmul.f32 0.5, %v2026_v13  ;;  %v5209_v15 = vpop.f32.mrb[19].mxu0 }
 0x9f4   : > { %v2031_v16 = vadd.f32 %v2030_v14, %v6048_v58 }
 0x9f6   : > { %v2032_v17 = vsel %vm1219_vm4, %v2031_v16, -inf }
 0x9f7   : > { %2033 = vmax.xlane.f32.xlu0 %v2032_v17 }
 0xa84   : > { %v2034_v18 = vpop.xlane.xlu0 %2033 }
 0xa85   : > { %v2035_v19 = vsub.f32 %v2031_v16, %v2034_v18 }
 0xa87   : > { %v2036_v20 = vmul.f32 1.442695, %v2035_v19 }
 0xa89   : > { %5578 = vpow2.f32 %v2036_v20  ;;  %v4817_v20 = vld [vmem:[%s5939_s28 + $0x6] sm:$0x3] }
 0xa93   : > { %v5579_v21 = vpop.eup %5578 }
 0xa94   : > { %v2038_v22 = vsel %vm1219_vm4, %v5579_v21, 0.0 }
 0xa95   : > { %2039 = vadd.xlane.f32.xlu1 %v2038_v22 }
 0xb22   : > { %v2040_v24 = vpop.xlane.xlu1 %2039 }
 0xb23   : > { %5580 = vrcp.f32 %v2040_v24  ;;  %v5540_v24 = vld [vmem:[%s5907_s0 + $0x40] sm:$0xff]  }
 0xb2d   : > { %v5581_v25 = vpop.eup %5580 }
 0xb2e   : > { %v2042_v27 = vmul.f32 %v5581_v25, %v5579_v21  ;;  %v2530_v21 = vsel %vm1669_vm5, %v4817_v20, 0 }
 0xb30   : > { %5213 = vmatmul.mubr.msk.f32.vlgmr.msra.gmra.mrb[28].mxu0 %vm1219_vm4, %v2042_v27  ;;  %v5541_v27 = vld [vmem:[%s5907_s0 + $0x48] sm:$0xff]  }
 0xb31   : > { %5222 = vmatpush3.bf16.msra.mxu0 %v5532_v26  ;;  %5225 = vmatprep.mubr.msk.bf16.mxu0 %vm5705_vm2, %v5704_v10 }
 0xb32   : > { %5223 = vmatprep.subr.bf16.mxu0 %v5704_v10 }
 0xb35   : > { %5224 = vmatpush3.bf16.msra.mxu0 %v5533_v28  ;;  %v5542_v28 = vld [vmem:[%s5928_s24 + $0x40] sm:$0xff]  }
 0xb36   : > { %5237 = vmatprep.subr.bf16.mxu0 %v5704_v10 }
 0xb38   : > { %5226 = vmatmul.mubr.msk.bf16.vlgmr.msra.gmra.mrb[32].mxu0 %vm918_vm1, %v6001_v23 }
 0xb39   : > { %5238 = vmatpush3.bf16.msra.mxu0 %v5534_v29  ;;  %5241 = vmatprep.mubr.msk.bf16.mxu0 %vm5705_vm2, %v5704_v10  ;;  %v5543_v29 = vld [vmem:[%s5928_s24 + $0x48] sm:$0xff]  }
 0xb3a   : > { %5239 = vmatprep.subr.bf16.mxu0 %v5704_v10 }
 0xb3d   : > { %5240 = vmatpush3.bf16.msra.mxu0 %v5535_v30 }
 0xb3e   : > { %5269 = vmatprep.subr.bf16.mxu0 %v5704_v10 }
 0xb40   : > { %5242 = vmatmul.mubr.msk.bf16.vlgmr.msra.gmra.mrb[36].mxu0 %vm918_vm1, %v6001_v23 }
 0xb41   : > { %5270 = vmatpush3.bf16.msra.mxu0 %v5536_v31  ;;  %5273 = vmatprep.mubr.msk.bf16.mxu0 %vm5705_vm2, %v5704_v10 }
 0xb42   : > { %5271 = vmatprep.subr.bf16.mxu0 %v5704_v10 }
 0xb45   : > { %5272 = vmatpush3.bf16.msra.mxu0 %v5537_v32 }
 0xb46   : > { %5285 = vmatprep.subr.mxu0 %v5704_v10 }
 0xb48   : > { %5274 = vmatmul.mubr.msk.bf16.vlgmr.msra.gmra.mrb[40].mxu0 %vm918_vm1, %v6001_v23 }
 0xb49   : > { %5287 = vmatprep.mubr.msk.f32.mxu0 %vm5705_vm2, %v5704_v10 }
 0xc03   : > { %v2112_v35 = vpop.f32.mrb[28].mxu0 }
 0xc04   : > { %v2116_v37 = vpack.c.bf16 %v2112_v35, %v2112_v35  ;;  %v5214_v38 = vpop.f32.mrb[29].mxu0  ;;  %v4824_v35 = vld [vmem:[%s6573_s26 + $0x4] ss:$0 sm:$0xff] }
 0xc06   : > { %5218 = vmatmul.mubr.msk.bf16.vlgmr.msra.gmra.mrb[28].mxu1 %vm1140_vm3, %v2116_v37 }
 0xc07   : > { %5230 = vmatpush3.bf16.msra.mxu1 %v5538_v36  ;;  %5233 = vmatprep.mubr.msk.bf16.mxu1 %vm5705_vm2, %v5704_v10 }
 0xc08   : > { %5231 = vmatprep.subr.bf16.mxu1 %v5704_v10 }
 0xc0b   : > { %v2225_v40 = vpop.f32.mrb[32].mxu0  ;;  %5232 = vmatpush3.bf16.msra.mxu1 %v5539_v39 }
 0xc0c   : > { %v5227_v41 = vpop.f32.mrb[33].mxu0  ;;  %5245 = vmatprep.subr.mxu1 %v5704_v10  ;;  %v2226_v5 = vadd.f32 %v4792_v63, %v2225_v40  ;;  %v5545_v63 = vld [vmem:[%s5907_s0 + $0x58] sm:$0xff]  }
 0xc0d   : > { %v2228_v42 = vpop.f32.mrb[34].mxu0  ;;  %v4842_v41 = vld [vmem:[%s5933_s3 + $0x4] ss:$0 sm:$0xff] }
 0xc0e   : > { %v5228_v43 = vpop.f32.mrb[35].mxu0  ;;  %5234 = vmatmul.mubr.msk.bf16.vlgmr.msra.gmra.mrb[32].mxu1 %vm918_vm1, %v6001_v23 }
 0xc0f   : > { %5247 = vmatprep.mubr.msk.f32.mxu1 %vm5705_vm2, %v5704_v10 }
 0xc13   : > { %v2355_v44 = vpop.f32.mrb[36].mxu0 }
 0xc14   : > { %v5243_v45 = vpop.f32.mrb[37].mxu0  ;;  %v2356_v6 = vadd.f32 %v4810_v2, %v2355_v44  ;;  %v4849_v2 = vld [vmem:[%s5939_s28 + $0x8] sm:$0x3] }
 0xc15   : > { %v2358_v46 = vpop.f32.mrb[38].mxu0 }
 0xc16   : > { %v5244_v47 = vpop.f32.mrb[39].mxu0 }
 0xc1b   : > { %v2697_v49 = vpop.f32.mrb[40].mxu0 }
 0xc1c   : > { %v2698_v50 = vadd.f32 %v4833_v48, %v2697_v49  ;;  %v5275_v51 = vpop.f32.mrb[41].mxu0 }
 0xc1d   : > { %v2700_v52 = vpop.f32.mrb[42].mxu0 }
 0xc1e   : > { %v5276_v53 = vpop.f32.mrb[43].mxu0  ;;  %5286 = vmatpush3.xpose.msk.msra.mxu0 %vm1140_vm3, %v2698_v50 }
 0xc1f   : > { %5290 = vmatprep.subr.mxu0 %v5704_v10 }
 0xcd9   : > { %v2159_v54 = vpop.f32.mrb[28].mxu1 }
 0xcda   : > { %v6172_v55 = vadd.f32 %v2159_v54, %v6116_v60  ;;  %v5219_v56 = vpop.f32.mrb[29].mxu1 }
 0xcdb   : > { %v2162_v57 = vpop.f32.mrb[30].mxu1 }
 0xcdc   : > { %v5220_v59 = vpop.f32.mrb[31].mxu1 }
 0xce1   : > { %v2290_v62 = vpop.f32.mrb[32].mxu1 }
 0xce2   : > { %v2291_v0 = vadd.f32 %v4801_v61, %v2290_v62  ;;  %v5235_v1 = vpop.f32.mrb[33].mxu1  ;;  %v5544_v61 = vld [vmem:[%s5907_s0 + $0x50] sm:$0xff]  }
 0xce3   : > { %v2293_v3 = vpop.f32.mrb[34].mxu1  ;;  %v5547_v1 = vld [vmem:[%s5928_s24 + $0x58] sm:$0xff]  }
 0xce4   : > { %v5236_v4 = vpop.f32.mrb[35].mxu1  ;;  %5246 = vmatpush3.xpose.msk.msra.mxu1 %vm1140_vm3, %v2291_v0  ;;  %v5546_v0 = vld [vmem:[%s5928_s24 + $0x50] sm:$0xff]   ;;  %v2937_v3 = vsel %vm1669_vm5, %v4849_v2, 0 }
 0xce5   : > { %5250 = vmatprep.subr.mxu1 %v5704_v10 }
 0xce7   : > { %5248 = vmatmul.mubr.msk.f32.vlgmr.msra.gmra.mrb[14].mxu1 %vm1140_vm3, %v2226_v5  ;;  %v5548_v5 = vld [vmem:[%s5918_s22 + $0x50] sm:$0xff]  }
 0xce8   : > { %5251 = vmatpush3.msra.mxu1 %v2356_v6  ;;  %5252 = vmatprep.mubr.msk.f32.mxu1 %vm5705_vm2, %v5704_v10 }
 0xce9   : > { %5255 = vmatprep.subr.bf16.mxu1 %v5704_v10 }
 0xdba   : > { %v2433_v60 = vpop.f32.mrb[14].mxu1 }
 0xdbb   : > { %v2437_v7 = vmul.f32 0.5, %v2433_v60  ;;  %v5249_v8 = vpop.f32.mrb[15].mxu1 }
 0xdbd   : > { %v2438_v9 = vadd.f32 %v2437_v7, %v6048_v58  ;;  %v5549_v7 = vld [vmem:[%s5918_s22 + $0x58] sm:$0xff]  }
 0xdbf   : > { %v2439_v11 = vsel %vm1219_vm4, %v2438_v9, -inf }
 0xdc0   : > { %2440 = vmax.xlane.f32.xlu0 %v2439_v11 }
 0xe4d   : > { %v2441_v12 = vpop.xlane.xlu0 %2440 }
 0xe4e   : > { %v2442_v13 = vsub.f32 %v2438_v9, %v2441_v12 }
 0xe50   : > { %v2443_v14 = vmul.f32 1.442695, %v2442_v13 }
 0xe52   : > { %5582 = vpow2.f32 %v2443_v14 }
 0xe5c   : > { %v5583_v15 = vpop.eup %5582 }
 0xe5d   : > { %v2445_v16 = vsel %vm1219_vm4, %v5583_v15, 0.0 }
 0xe5e   : > { %2446 = vadd.xlane.f32.xlu1 %v2445_v16 }
 0xeeb   : > { %v2447_v17 = vpop.xlane.xlu1 %2446 }
 0xeec   : > { %5584 = vrcp.f32 %v2447_v17 }
 0xef6   : > { %v5585_v18 = vpop.eup %5584 }
 0xef7   : > { %v2449_v19 = vmul.f32 %v5585_v18, %v5583_v15 }
 0xef9   : > { %5253 = vmatmul.mubr.msk.f32.vlgmr.msra.gmra.mrb[36].mxu1 %vm1219_vm4, %v2449_v19 }
 0xefa   : > { %5257 = vmatprep.mubr.msk.bf16.mxu1 %vm5705_vm2, %v5704_v10  ;;  %5256 = vmatpush3.bf16.msra.mxu1 %v2530_v21 }
 0xefb   : > { %5261 = vmatprep.subr.bf16.mxu1 %v5704_v10 }
 0xfcc   : > { %v2519_v22 = vpop.f32.mrb[36].mxu1 }
 0xfcd   : > { %v2523_v25 = vpack.c.bf16 %v2519_v22, %v2519_v22  ;;  %v5254_v26 = vpop.f32.mrb[37].mxu1  ;;  %v4865_v22 = vld [vmem:[%s5923_s21 + $0x5] ss:$0 sm:$0xff] }
 0xfcf   : > { %5258 = vmatmul.mubr.msk.bf16.vlgmr.msra.gmra.mrb[40].mxu1 %vm1140_vm3, %v2523_v25  ;;  %v4856_v25 = vld [vmem:[%s6573_s26 + $0x5] ss:$0 sm:$0xff] }
 0xfd0   : > { %5262 = vmatpush3.bf16.msra.mxu1 %v5540_v24  ;;  %5265 = vmatprep.mubr.msk.bf16.mxu1 %vm5705_vm2, %v5704_v10 }
 0xfd1   : > { %5263 = vmatprep.subr.bf16.mxu1 %v5704_v10 }
 0xfd4   : > { %5264 = vmatpush3.bf16.msra.mxu1 %v5541_v27 }
 0xfd5   : > { %5277 = vmatprep.subr.bf16.mxu1 %v5704_v10 }
 0xfd7   : > { %5266 = vmatmul.mubr.msk.bf16.vlgmr.msra.gmra.mrb[44].mxu1 %vm918_vm1, %v6001_v23 }
 0xfd8   : > { %5278 = vmatpush3.bf16.msra.mxu1 %v5542_v28  ;;  %5281 = vmatprep.mubr.msk.bf16.mxu1 %vm5705_vm2, %v5704_v10  ;;  %v4874_v28 = vld [vmem:[%s5933_s3 + $0x5] ss:$0 sm:$0xff] }
 0xfd9   : > { %5279 = vmatprep.subr.bf16.mxu1 %v5704_v10 }
 0xfdc   : > { %5280 = vmatpush3.bf16.msra.mxu1 %v5543_v29 }
 0xfdd   : > { %5295 = vmatprep.subr.bf16.mxu1 %v5704_v10 }
 0xfdf   : > { %5282 = vmatmul.mubr.msk.bf16.vlgmr.msra.gmra.mrb[48].mxu1 %vm918_vm1, %v6001_v23 }
 0xfe0   : > { %5297 = vmatprep.mubr.msk.bf16.mxu1 %vm5705_vm2, %v5704_v10  ;;  %5296 = vmatpush3.bf16.msra.mxu1 %v2937_v3 }
 0xfe1   : > { %5309 = vmatprep.subr.bf16.mxu1 %v5704_v10 }
0x10a2   : > { %v2566_v30 = vpop.f32.mrb[40].mxu1 }
0x10a3   : > { %v6212_v31 = vadd.f32 %v2566_v30, %v6172_v55  ;;  %v5259_v32 = vpop.f32.mrb[41].mxu1 }
0x10a4   : > { %v2569_v33 = vpop.f32.mrb[42].mxu1 }
0x10a5   : > { %v5260_v34 = vpop.f32.mrb[43].mxu1 }
0x10aa   : > { %v2632_v36 = vpop.f32.mrb[44].mxu1 }
0x10ab   : > { %v2633_v37 = vadd.f32 %v4824_v35, %v2632_v36  ;;  %v5267_v38 = vpop.f32.mrb[45].mxu1 }
0x10ac   : > { %v2635_v39 = vpop.f32.mrb[46].mxu1 }
0x10ad   : > { %v5268_v40 = vpop.f32.mrb[47].mxu1  ;;  %5288 = vmatmul.mubr.msk.f32.vlgmr.msra.gmra.mrb[30].mxu0 %vm1140_vm3, %v2633_v37 }
0x10ae   : > { %5292 = vmatprep.mubr.msk.f32.mxu0 %vm5705_vm2, %v5704_v10 }
0x10b2   : > { %v2762_v42 = vpop.f32.mrb[48].mxu1 }
0x10b3   : > { %v2763_v43 = vadd.f32 %v4842_v41, %v2762_v42  ;;  %v5283_v44 = vpop.f32.mrb[49].mxu1 }
0x10b4   : > { %v2765_v45 = vpop.f32.mrb[50].mxu1 }
0x10b5   : > { %v5284_v46 = vpop.f32.mrb[51].mxu1  ;;  %5291 = vmatpush3.msra.mxu0 %v2763_v43  ;;  %v5550_v45 = vld [vmem:[%s5907_s0 + $0x60] sm:$0xff]  }
0x10b6   : > { %5301 = vmatprep.subr.bf16.mxu0 %v5704_v10 }
0x1180   : > { %v2840_v47 = vpop.f32.mrb[30].mxu0 }
0x1181   : > { %v2844_v48 = vmul.f32 0.5, %v2840_v47  ;;  %v5289_v49 = vpop.f32.mrb[31].mxu0  ;;  %v5551_v47 = vld [vmem:[%s5907_s0 + $0x68] sm:$0xff]  }
0x1182   : > { %v5553_v49 = vld [vmem:[%s5928_s24 + $0x68] sm:$0xff]  }
0x1183   : > { %v2845_v50 = vadd.f32 %v2844_v48, %v6048_v58  ;;  %v5552_v48 = vld [vmem:[%s5928_s24 + $0x60] sm:$0xff]  }
0x1185   : > { %v2846_v51 = vsel %vm1219_vm4, %v2845_v50, -inf }
0x1186   : > { %2847 = vmax.xlane.f32.xlu0 %v2846_v51 }
0x1213   : > { %v2848_v52 = vpop.xlane.xlu0 %2847 }
0x1214   : > { %v2849_v53 = vsub.f32 %v2845_v50, %v2848_v52  ;;  %v4881_v50 = vld [vmem:[%s5939_s28 + $0xa] sm:$0x3] }
0x1215   : > { %v3344_v51 = vsel %vm1669_vm5, %v4881_v50, 0 }
0x1216   : > { %v2850_v54 = vmul.f32 1.442695, %v2849_v53  ;;  %v5554_v53 = vld [vmem:[%s5918_s22 + $0x60] sm:$0xff]  }
0x1218   : > { %5586 = vpow2.f32 %v2850_v54 }
0x1222   : > { %v5587_v55 = vpop.eup %5586 }
0x1223   : > { %v2852_v56 = vsel %vm1219_vm4, %v5587_v55, 0.0 }
0x1224   : > { %2853 = vadd.xlane.f32.xlu1 %v2852_v56  ;;  %v5555_v56 = vld [vmem:[%s5918_s22 + $0x68] sm:$0xff]  }
0x12b1   : > { %v2854_v57 = vpop.xlane.xlu1 %2853 }
0x12b2   : > { %5588 = vrcp.f32 %v2854_v57 }
0x12bc   : > { %v5589_v59 = vpop.eup %5588 }
0x12bd   : > { %v2856_v62 = vmul.f32 %v5589_v59, %v5587_v55 }
0x12bf   : > { %5293 = vmatmul.mubr.msk.f32.vlgmr.msra.gmra.mrb[44].mxu0 %vm1219_vm4, %v2856_v62 }
0x12c0   : > { %5302 = vmatpush3.bf16.msra.mxu0 %v5544_v61  ;;  %5305 = vmatprep.mubr.msk.bf16.mxu0 %vm5705_vm2, %v5704_v10 }
0x12c1   : > { %5303 = vmatprep.subr.bf16.mxu0 %v5704_v10 }
0x12c4   : > { %5304 = vmatpush3.bf16.msra.mxu0 %v5545_v63 }
0x12c5   : > { %5317 = vmatprep.subr.bf16.mxu0 %v5704_v10 }
0x12c7   : > { %5306 = vmatmul.mubr.msk.bf16.vlgmr.msra.gmra.mrb[48].mxu0 %vm918_vm1, %v6001_v23 }
0x12c8   : > { %5318 = vmatpush3.bf16.msra.mxu0 %v5546_v0  ;;  %5321 = vmatprep.mubr.msk.bf16.mxu0 %vm5705_vm2, %v5704_v10 }
0x12c9   : > { %5319 = vmatprep.subr.bf16.mxu0 %v5704_v10 }
0x12cc   : > { %5320 = vmatpush3.bf16.msra.mxu0 %v5547_v1 }
0x12cd   : > { %5335 = vmatprep.subr.bf16.mxu0 %v5704_v10 }
0x12cf   : > { %5322 = vmatmul.mubr.msk.bf16.vlgmr.msra.gmra.mrb[52].mxu0 %vm918_vm1, %v6001_v23 }
0x12d0   : > { %5337 = vmatprep.mubr.msk.bf16.mxu0 %vm5705_vm2, %v5704_v10  ;;  %5336 = vmatpush3.bf16.msra.mxu0 %v3344_v51 }
0x12d1   : > { %5349 = vmatprep.subr.bf16.mxu0 %v5704_v10 }
0x1392   : > { %v2926_v4 = vpop.f32.mrb[44].mxu0 }
0x1393   : > { %v2930_v6 = vpack.c.bf16 %v2926_v4, %v2926_v4  ;;  %v5294_v60 = vpop.f32.mrb[45].mxu0 }
0x1395   : > { %5298 = vmatmul.mubr.msk.bf16.vlgmr.msra.gmra.mrb[52].mxu1 %vm1140_vm3, %v2930_v6 }
0x1396   : > { %5310 = vmatpush3.bf16.msra.mxu1 %v5548_v5  ;;  %5313 = vmatprep.mubr.msk.bf16.mxu1 %vm5705_vm2, %v5704_v10 }
0x1397   : > { %5311 = vmatprep.subr.bf16.mxu1 %v5704_v10 }
0x139a   : > { %v3039_v8 = vpop.f32.mrb[48].mxu0  ;;  %5312 = vmatpush3.bf16.msra.mxu1 %v5549_v7  ;;  %v4897_v7 = vld [vmem:[%s5923_s21 + $0x6] ss:$0 sm:$0xff] }
0x139b   : > { %v5307_v9 = vpop.f32.mrb[49].mxu0  ;;  %5325 = vmatprep.subr.mxu1 %v5704_v10  ;;  %v3040_v32 = vadd.f32 %v4856_v25, %v3039_v8 }
0x139c   : > { %v3042_v11 = vpop.f32.mrb[50].mxu0  ;;  %v4888_v9 = vld [vmem:[%s6573_s26 + $0x6] ss:$0 sm:$0xff] }
0x139d   : > { %v5308_v12 = vpop.f32.mrb[51].mxu0  ;;  %5314 = vmatmul.mubr.msk.bf16.vlgmr.msra.gmra.mrb[56].mxu1 %vm918_vm1, %v6001_v23 }
0x139e   : > { %5327 = vmatprep.mubr.msk.f32.mxu1 %vm5705_vm2, %v5704_v10 }
0x13a2   : > { %v3169_v13 = vpop.f32.mrb[52].mxu0 }
0x13a3   : > { %v5323_v14 = vpop.f32.mrb[53].mxu0  ;;  %v3170_v33 = vadd.f32 %v4874_v28, %v3169_v13  ;;  %v4906_v13 = vld [vmem:[%s5933_s3 + $0x6] ss:$0 sm:$0xff] }
0x13a4   : > { %v3172_v15 = vpop.f32.mrb[54].mxu0 }
0x13a5   : > { %v5324_v16 = vpop.f32.mrb[55].mxu0 }
0x1468   : > { %v2973_v17 = vpop.f32.mrb[52].mxu1 }
0x1469   : > { %v6257_v18 = vadd.f32 %v2973_v17, %v6212_v31  ;;  %v5299_v19 = vpop.f32.mrb[53].mxu1 }
0x146a   : > { %v2976_v20 = vpop.f32.mrb[54].mxu1 }
0x146b   : > { %v5300_v21 = vpop.f32.mrb[55].mxu1 }
0x1470   : > { %v3104_v24 = vpop.f32.mrb[56].mxu1 }
0x1471   : > { %v3105_v26 = vadd.f32 %v4865_v22, %v3104_v24  ;;  %v5315_v27 = vpop.f32.mrb[57].mxu1 }
0x1472   : > { %v3107_v29 = vpop.f32.mrb[58].mxu1 }
0x1473   : > { %v5316_v30 = vpop.f32.mrb[59].mxu1  ;;  %5326 = vmatpush3.xpose.msk.msra.mxu1 %vm1140_vm3, %v3105_v26 }
0x1474   : > { %5330 = vmatprep.subr.mxu1 %v5704_v10 }
0x1476   : > { %5328 = vmatmul.mubr.msk.f32.vlgmr.msra.gmra.mrb[38].mxu1 %vm1140_vm3, %v3040_v32  ;;  %v5556_v32 = vld [vmem:[%s5907_s0 + $0x70] sm:$0xff]  }
0x1477   : > { %5331 = vmatpush3.msra.mxu1 %v3170_v33  ;;  %5332 = vmatprep.mubr.msk.f32.mxu1 %vm5705_vm2, %v5704_v10 }
0x1478   : > { %5341 = vmatprep.subr.bf16.mxu1 %v5704_v10 }
0x1549   : > { %v3247_v31 = vpop.f32.mrb[38].mxu1 }
0x154a   : > { %v3251_v34 = vmul.f32 0.5, %v3247_v31  ;;  %v5329_v35 = vpop.f32.mrb[39].mxu1  ;;  %v5558_v31 = vld [vmem:[%s5928_s24 + $0x70] sm:$0xff]  }
0x154b   : > { %v4913_v35 = vld [vmem:[%s5939_s28 + $0xc] sm:$0x3] }
0x154c   : > { %v3252_v36 = vadd.f32 %v3251_v34, %v6048_v58  ;;  %v5559_v34 = vld [vmem:[%s5928_s24 + $0x78] sm:$0xff]  }
0x154e   : > { %v3253_v37 = vsel %vm1219_vm4, %v3252_v36, -inf }
0x154f   : > { %3254 = vmax.xlane.f32.xlu0 %v3253_v37 }
0x15dc   : > { %v3255_v38 = vpop.xlane.xlu0 %3254 }
0x15dd   : > { %v3256_v39 = vsub.f32 %v3252_v36, %v3255_v38  ;;  %v3751_v36 = vsel %vm1669_vm5, %v4913_v35, 0  ;;  %v5560_v38 = vld [vmem:[%s5918_s22 + $0x70] sm:$0xff]  }
0x15df   : > { %v3257_v40 = vmul.f32 1.442695, %v3256_v39 }
0x15e1   : > { %5590 = vpow2.f32 %v3257_v40 }
0x15eb   : > { %v5591_v41 = vpop.eup %5590 }
0x15ec   : > { %v3259_v42 = vsel %vm1219_vm4, %v5591_v41, 0.0 }
0x15ed   : > { %3260 = vadd.xlane.f32.xlu1 %v3259_v42 }
0x167a   : > { %v3261_v43 = vpop.xlane.xlu1 %3260 }
0x167b   : > { %5592 = vrcp.f32 %v3261_v43 }
0x1685   : > { %v5593_v44 = vpop.eup %5592 }
0x1686   : > { %v3263_v46 = vmul.f32 %v5593_v44, %v5591_v41  ;;  %v5561_v41 = vld [vmem:[%s5918_s22 + $0x78] sm:$0xff]  }
0x1688   : > { %5333 = vmatmul.mubr.msk.f32.vlgmr.msra.gmra.mrb[60].mxu1 %vm1219_vm4, %v3263_v46 }
0x1689   : > { %5342 = vmatpush3.bf16.msra.mxu1 %v5550_v45  ;;  %5345 = vmatprep.mubr.msk.bf16.mxu1 %vm5705_vm2, %v5704_v10 }
0x168a   : > { %5343 = vmatprep.subr.bf16.mxu1 %v5704_v10 }
0x168d   : > { %5344 = vmatpush3.bf16.msra.mxu1 %v5551_v47 }
0x168e   : > { %5357 = vmatprep.subr.bf16.mxu1 %v5704_v10 }
0x1690   : > { %5346 = vmatmul.mubr.msk.bf16.vlgmr.msra.gmra.mrb[64].mxu1 %vm918_vm1, %v6001_v23 }
0x1691   : > { %5358 = vmatpush3.bf16.msra.mxu1 %v5552_v48  ;;  %5361 = vmatprep.mubr.msk.bf16.mxu1 %vm5705_vm2, %v5704_v10 }
0x1692   : > { %5359 = vmatprep.subr.bf16.mxu1 %v5704_v10 }
0x1695   : > { %5360 = vmatpush3.bf16.msra.mxu1 %v5553_v49 }
0x1696   : > { %5375 = vmatprep.subr.bf16.mxu1 %v5704_v10 }
0x1698   : > { %5362 = vmatmul.mubr.msk.bf16.vlgmr.msra.gmra.mrb[68].mxu1 %vm918_vm1, %v6001_v23 }
0x1699   : > { %5377 = vmatprep.mubr.msk.bf16.mxu1 %vm5705_vm2, %v5704_v10  ;;  %5376 = vmatpush3.bf16.msra.mxu1 %v3751_v36  ;;  %v5562_v36 = vld [vmem:[%s5956_s8] sm:$0xff]  }
0x169a   : > { %5389 = vmatprep.subr.bf16.mxu1 %v5704_v10 }
0x175b   : > { %v3333_v52 = vpop.f32.mrb[60].mxu1 }
0x175c   : > { %v3337_v54 = vpack.c.bf16 %v3333_v52, %v3333_v52  ;;  %v5334_v55 = vpop.f32.mrb[61].mxu1 }
0x175d   : > { %v4929_v55 = vld [vmem:[%s5923_s21 + $0x7] ss:$0 sm:$0xff] }
0x175e   : > { %5338 = vmatmul.mubr.msk.bf16.vlgmr.msra.gmra.mrb[56].mxu0 %vm1140_vm3, %v3337_v54 }
0x175f   : > { %5350 = vmatpush3.bf16.msra.mxu0 %v5554_v53  ;;  %5353 = vmatprep.mubr.msk.bf16.mxu0 %vm5705_vm2, %v5704_v10 }
0x1760   : > { %5351 = vmatprep.subr.bf16.mxu0 %v5704_v10 }
0x1763   : > { %v3446_v57 = vpop.f32.mrb[64].mxu1  ;;  %5352 = vmatpush3.bf16.msra.mxu0 %v5555_v56 }
0x1764   : > { %v5347_v59 = vpop.f32.mrb[65].mxu1  ;;  %5365 = vmatprep.subr.mxu0 %v5704_v10  ;;  %v3447_v16 = vadd.f32 %v4888_v9, %v3446_v57  ;;  %v4920_v57 = vld [vmem:[%s6573_s26 + $0x7] ss:$0 sm:$0xff] }
0x1765   : > { %v3449_v61 = vpop.f32.mrb[66].mxu1 }
0x1766   : > { %v5348_v62 = vpop.f32.mrb[67].mxu1  ;;  %5354 = vmatmul.mubr.msk.bf16.vlgmr.msra.gmra.mrb[60].mxu0 %vm918_vm1, %v6001_v23 }
0x1767   : > { %5367 = vmatprep.mubr.msk.f32.mxu0 %vm5705_vm2, %v5704_v10 }
0x176b   : > { %v3576_v63 = vpop.f32.mrb[68].mxu1 }
0x176c   : > { %v5363_v0 = vpop.f32.mrb[69].mxu1  ;;  %v3577_v17 = vadd.f32 %v4906_v13, %v3576_v63 }
0x176d   : > { %v3579_v1 = vpop.f32.mrb[70].mxu1 }
0x176e   : > { %v5364_v2 = vpop.f32.mrb[71].mxu1 }
0x1831   : > { %v3380_v3 = vpop.f32.mrb[56].mxu0 }
0x1832   : > { %v6305_v4 = vadd.f32 %v3380_v3, %v6257_v18  ;;  %v5339_v5 = vpop.f32.mrb[57].mxu0 }
0x1833   : > { %v3383_v6 = vpop.f32.mrb[58].mxu0  ;;  %v5604_v5 = vld [vmem:[%s6574_s7] sm:$0xff] }
0x1834   : > { %v5340_v60 = vpop.f32.mrb[59].mxu0 }
0x1839   : > { %v3511_v8 = vpop.f32.mrb[60].mxu0 }
0x183a   : > { %v3512_v11 = vadd.f32 %v4897_v7, %v3511_v8  ;;  %v5355_v12 = vpop.f32.mrb[61].mxu0 }
0x183b   : > { %v3514_v14 = vpop.f32.mrb[62].mxu0 }
0x183c   : > { %v5356_v15 = vpop.f32.mrb[63].mxu0  ;;  %5366 = vmatpush3.xpose.msk.msra.mxu0 %vm1140_vm3, %v3512_v11 }
0x183d   : > { %5370 = vmatprep.subr.mxu0 %v5704_v10 }
0x183f   : > { %5368 = vmatmul.mubr.msk.f32.vlgmr.msra.gmra.mrb[46].mxu0 %vm1140_vm3, %v3447_v16  ;;  %v4945_v16 = vld [vmem:[%s5939_s28 + $0xe] sm:$0x3] }
0x1840   : > { %5371 = vmatpush3.msra.mxu0 %v3577_v17  ;;  %5372 = vmatprep.mubr.msk.f32.mxu0 %vm5705_vm2, %v5704_v10  ;;  %v4158_v17 = vsel %vm1669_vm5, %v4945_v16, 0 }
0x1841   : > { %5381 = vmatprep.subr.bf16.mxu0 %v5704_v10 }
0x1912   : > { %v3654_v18 = vpop.f32.mrb[46].mxu0 }
0x1913   : > { %v3658_v19 = vmul.f32 0.5, %v3654_v18  ;;  %v5369_v20 = vpop.f32.mrb[47].mxu0 }
0x1915   : > { %v3659_v21 = vadd.f32 %v3658_v19, %v6048_v58  ;;  %v5557_v58 = vld [vmem:[%s5907_s0 + $0x78] sm:$0xff]  }
0x1917   : > { %v3660_v22 = vsel %vm1219_vm4, %v3659_v21, -inf }
0x1918   : > { %3661 = vmax.xlane.f32.xlu0 %v3660_v22 }
0x19a5   : > { %v3662_v24 = vpop.xlane.xlu0 %3661 }
0x19a6   : > { %v3663_v25 = vsub.f32 %v3659_v21, %v3662_v24 }
0x19a8   : > { %v3664_v26 = vmul.f32 1.442695, %v3663_v25 }
0x19aa   : > { %5594 = vpow2.f32 %v3664_v26 }
0x19b4   : > { %v5595_v27 = vpop.eup %5594 }
0x19b5   : > { %v3666_v28 = vsel %vm1219_vm4, %v5595_v27, 0.0 }
0x19b6   : > { %3667 = vadd.xlane.f32.xlu1 %v3666_v28 }
0x1a43   : > { %v3668_v29 = vpop.xlane.xlu1 %3667 }
0x1a44   : > { %5596 = vrcp.f32 %v3668_v29 }
0x1a4e   : > { %v5597_v30 = vpop.eup %5596 }
0x1a4f   : > { %v3670_v33 = vmul.f32 %v5597_v30, %v5595_v27  ;;  %v5605_v27 = vld [vmem:[#allocation2] sm:$0xff] }
0x1a51   : > { %5373 = vmatmul.mubr.msk.f32.vlgmr.msra.gmra.mrb[64].mxu0 %vm1219_vm4, %v3670_v33 }
0x1a52   : > { %5382 = vmatpush3.bf16.msra.mxu0 %v5556_v32  ;;  %5385 = vmatprep.mubr.msk.bf16.mxu0 %vm5705_vm2, %v5704_v10 }
0x1a53   : > { %5383 = vmatprep.subr.bf16.mxu0 %v5704_v10 }
0x1a56   : > { %5384 = vmatpush3.bf16.msra.mxu0 %v5557_v58 }
0x1a57   : > { %5397 = vmatprep.subr.bf16.mxu0 %v5704_v10 }
0x1a59   : > { %5386 = vmatmul.mubr.msk.bf16.vlgmr.msra.gmra.mrb[68].mxu0 %vm918_vm1, %v6001_v23 }
0x1a5a   : > { %5398 = vmatpush3.bf16.msra.mxu0 %v5558_v31  ;;  %5401 = vmatprep.mubr.msk.bf16.mxu0 %vm5705_vm2, %v5704_v10 }
0x1a5b   : > { %5399 = vmatprep.subr.bf16.mxu0 %v5704_v10 }
0x1a5e   : > { %5400 = vmatpush3.bf16.msra.mxu0 %v5559_v34 }
0x1a5f   : > { %5415 = vmatprep.subr.bf16.mxu0 %v5704_v10 }
0x1a61   : > { %5402 = vmatmul.mubr.msk.bf16.vlgmr.msra.gmra.mrb[72].mxu0 %vm918_vm1, %v6001_v23 }
0x1a62   : > { %5417 = vmatprep.mubr.msk.bf16.mxu0 %vm5705_vm2, %v5704_v10  ;;  %5416 = vmatpush3.bf16.msra.mxu0 %v4158_v17 }
0x1a63   : > { %5429 = vmatprep.subr.bf16.mxu0 %v5704_v10 }
0x1b24   : > { %v3740_v37 = vpop.f32.mrb[64].mxu0 }
0x1b25   : > { %v3744_v39 = vpack.c.bf16 %v3740_v37, %v3740_v37  ;;  %v5374_v40 = vpop.f32.mrb[65].mxu0  ;;  %v5563_v37 = vld [vmem:[%s5956_s8 + $0x8] sm:$0xff]  }
0x1b27   : > { %5378 = vmatmul.mubr.msk.bf16.vlgmr.msra.gmra.mrb[72].mxu1 %vm1140_vm3, %v3744_v39  ;;  %v5565_v39 = vld [vmem:[%s5970_s12 + $0x8] sm:$0xff]  }
0x1b28   : > { %5390 = vmatpush3.bf16.msra.mxu1 %v5560_v38  ;;  %5393 = vmatprep.mubr.msk.bf16.mxu1 %vm5705_vm2, %v5704_v10  ;;  %v5564_v38 = vld [vmem:[%s5970_s12] sm:$0xff]  }
0x1b29   : > { %5391 = vmatprep.subr.bf16.mxu1 %v5704_v10 }
0x1b2c   : > { %v3853_v42 = vpop.f32.mrb[68].mxu0  ;;  %5392 = vmatpush3.bf16.msra.mxu1 %v5561_v41 }
0x1b2d   : > { %v5387_v43 = vpop.f32.mrb[69].mxu0  ;;  %5405 = vmatprep.subr.mxu1 %v5704_v10  ;;  %v3854_v0 = vadd.f32 %v4920_v57, %v3853_v42 }
0x1b2e   : > { %v3856_v44 = vpop.f32.mrb[70].mxu0  ;;  %v4948_v43 = vld [vmem:[%s6578_s10] ss:$0 sm:$0xff] }
0x1b2f   : > { %v5388_v45 = vpop.f32.mrb[71].mxu0  ;;  %5394 = vmatmul.mubr.msk.bf16.vlgmr.msra.gmra.mrb[76].mxu1 %vm918_vm1, %v6001_v23  ;;  %v4938_v23 = vld [vmem:[%s5933_s3 + $0x7] ss:$0 sm:$0xff]  ;;  %s6575_s3 = sld [smem:[#allocation31_spill]] }
0x1b30   : > { %5407 = vmatprep.mubr.msk.f32.mxu1 %vm5705_vm2, %v5704_v10 }
0x1b34   : > { %v3983_v46 = vpop.f32.mrb[72].mxu0 }
0x1b35   : > { %v5403_v47 = vpop.f32.mrb[73].mxu0  ;;  %v3984_v1 = vadd.f32 %v4938_v23, %v3983_v46  ;;  %s6576_s28 = scalar_lea.vmem %s6575_s3, %s5890_s1  ;;  %v4949_v46 = vld [vmem:[%s889_s19] ss:$0 sm:$0xff] }
0x1b36   : > { %v3986_v48 = vpop.f32.mrb[74].mxu0  ;;  %v4947_v25 = vld [vmem:[%s6576_s28] ss:$0 sm:$0xff] }
0x1b37   : > { %v5404_v49 = vpop.f32.mrb[75].mxu0 }
0x1bfa   : > { %v3787_v50 = vpop.f32.mrb[72].mxu1 }
0x1bfb   : > { %v3793_v51 = vadd.f32 %v3787_v50, %v6305_v4  ;;  %v5379_v52 = vpop.f32.mrb[73].mxu1  ;;  %v5566_v50 = vld [vmem:[%s5970_s12 + $0x10] sm:$0xff]  }
0x1bfc   : > { %v3790_v53 = vpop.f32.mrb[74].mxu1  ;;  %v4950_v52 = vld [vmem:[%s897_s9] ss:$0 sm:$0xff]  ;;  %s6580_s9 = sld [smem:[#allocation9_spill]] }
0x1bfd   : > { %v5380_v54 = vpop.f32.mrb[75].mxu1 }
0x1c02   : > { %v3918_v56 = vpop.f32.mrb[76].mxu1  ;;  %p4960_p1 = scmp.ne.s32.totalorder %s6580_s9, 1 }
0x1c03   : > { %v3919_v59 = vadd.f32 %v4929_v55, %v3918_v56  ;;  %v5395_v61 = vpop.f32.mrb[77].mxu1  ;;  %s6581_s1 = sld [smem:[#allocation35_spill]] (!%p4960_p1)  ;;  %s6582_s6 = sld [smem:[#allocation36_spill]] (!%p4960_p1) }
0x1c04   : > { %v3921_v62 = vpop.f32.mrb[78].mxu1 }
0x1c05   : > { %v5396_v63 = vpop.f32.mrb[79].mxu1  ;;  %5406 = vmatpush3.xpose.msk.msra.mxu1 %vm1140_vm3, %v3919_v59 }
0x1c06   : > { %5410 = vmatprep.subr.mxu1 %v5704_v10 }
0x1c08   : > { %5408 = vmatmul.mubr.msk.f32.vlgmr.msra.gmra.mrb[62].mxu1 %vm1140_vm3, %v3854_v0 }
0x1c09   : > { %5411 = vmatpush3.msra.mxu1 %v3984_v1  ;;  %5412 = vmatprep.mubr.msk.f32.mxu1 %vm5705_vm2, %v5704_v10 }
0x1c0a   : > { %5421 = vmatprep.subr.bf16.mxu1 %v5704_v10 }
0x1cdb   : > { %v4061_v2 = vpop.f32.mrb[62].mxu1 }
0x1cdc   : > { %v4065_v3 = vmul.f32 0.5, %v4061_v2  ;;  %v5409_v4 = vpop.f32.mrb[63].mxu1 }
0x1cde   : > { %v4066_v6 = vadd.f32 %v5604_v5, %v4065_v3 }
0x1ce0   : > { %v4067_v60 = vsel %vm1219_vm4, %v4066_v6, -inf }
0x1ce1   : > { %4068 = vmax.xlane.f32.xlu0 %v4067_v60 }
0x1d6e   : > { %v4069_v7 = vpop.xlane.xlu0 %4068 }
0x1d6f   : > { %v4070_v8 = vsub.f32 %v4066_v6, %v4069_v7 }
0x1d71   : > { %v4071_v9 = vmul.f32 1.442695, %v4070_v8 }
0x1d73   : > { %5598 = vpow2.f32 %v4071_v9 }
0x1d7d   : > { %v5599_v11 = vpop.eup %5598 }
0x1d7e   : > { %v4073_v12 = vsel %vm1219_vm4, %v5599_v11, 0.0 }
0x1d7f   : > { %4074 = vadd.xlane.f32.xlu1 %v4073_v12  ;;  %v4961_v12 = vld [vmem:[%s6581_s1] ss:$0 sm:$0xff] (!%p4960_p1) }
0x1e0c   : > { %v4075_v13 = vpop.xlane.xlu1 %4074 }
0x1e0d   : > { %5600 = vrcp.f32 %v4075_v13 }
0x1e17   : > { %v5601_v14 = vpop.eup %5600 }
0x1e18   : > { %v4077_v15 = vmul.f32 %v5601_v14, %v5599_v11 }
0x1e1a   : > { %5413 = vmatmul.mubr.msk.f32.vlgmr.msra.gmra.mrb[80].mxu1 %vm1219_vm4, %v4077_v15  ;;  %v4962_v15 = vld [vmem:[%s6582_s6] ss:$0 sm:$0xff] (!%p4960_p1) }
0x1e1b   : > { %5425 = vmatprep.mubr.msk.bf16.mxu1 %vm5705_vm2, %v5704_v10  ;;  %5422 = vmatpush3.bf16.msra.mxu1 %v5562_v36 }
0x1e1c   : > { %5423 = vmatprep.subr.bf16.mxu1 %v5704_v10 }
0x1e1f   : > { %5424 = vmatpush3.bf16.msra.mxu1 %v5563_v37 }
0x1eed   : > { %v4147_v18 = vpop.f32.mrb[80].mxu1 }
0x1eee   : > { %v4151_v19 = vpack.c.bf16 %v4147_v18, %v4147_v18  ;;  %v5414_v20 = vpop.f32.mrb[81].mxu1 }
0x1ef0   : > { %5418 = vmatmul.mubr.msk.bf16.vlgmr.msra.gmra.mrb[76].mxu0 %vm1140_vm3, %v4151_v19 }
0x1ef1   : > { %5437 = vmatprep.mubr.msk.bf16.mxu0 %vm5705_vm2, %v5704_v10  ;;  %5430 = vmatpush3.bf16.msra.mxu0 %v5564_v38 }
0x1ef2   : > { %5431 = vmatprep.subr.bf16.mxu0 %v5704_v10 }
0x1ef5   : > { %5432 = vmatpush3.bf16.msra.mxu0 %v5565_v39 }
0x1ef6   : > { %5433 = vmatprep.subr.bf16.mxu0 %v5704_v10 }
0x1ef9   : > { %5434 = vmatpush3.bf16.msra.mxu0 %v5566_v50 }
0x1efa   : > { %5435 = vmatprep.subr.bf16.mxu0 %v5704_v10  ;;  %v4954_v10 = vld [vmem:[%s905_s11] ss:$0 sm:$0xff] }
0x1fc3   : > { %v4194_v21 = vpop.f32.mrb[76].mxu0 }
0x1fc4   : > { %v4200_v22 = vadd.f32 %v4194_v21, %v3793_v51  ;;  %v5419_v24 = vpop.f32.mrb[77].mxu0  ;;  %v5567_v51 = vld [vmem:[%s5970_s12 + $0x18] sm:$0xff]  }
0x1fc5   : > { %v4197_v26 = vpop.f32.mrb[78].mxu0  ;;  %5436 = vmatpush3.bf16.msra.mxu0 %v5567_v51 }
0x1fc6   : > { %v4201_v28 = vadd.f32 %v5605_v27, %v4200_v22  ;;  %v5420_v29 = vpop.f32.mrb[79].mxu0 }
0x1fc8   : > { %v4209_v30 = vadd.f32 %v4947_v25, %v4201_v28 }
0x1fca   : > { %v4212_v32 = vsel %vm918_vm1, %v4209_v30, 0.0 }
0x1fcb   : > { %4213 = vadd.xlane.f32.xlu0 %v4212_v32 }
0x2058   : > { %v4214_v33 = vpop.xlane.xlu0 %4213 }
0x2059   : > { %v4215_v58 = vmul.f32 0.03125, %v4214_v33 }
0x205b   : > { %v4216_v31 = vsub.f32 %v4209_v30, %v4215_v58 }
0x205d   : > { %v4217_v34 = vmul.f32 %v4216_v31, %v4216_v31  ;;  %v4228_v44 = vmul.f32 %v4948_v43, %v4216_v31 }
0x205f   : > { %v4218_v35 = vsel %vm918_vm1, %v4217_v34, 0.0 }
0x2060   : > { %4219 = vadd.xlane.f32.xlu1 %v4218_v35 }
0x20ed   : > { %v4220_v40 = vpop.xlane.xlu1 %4219 }
0x20ee   : > { %v4221_v41 = vmul.f32 0.03125, %v4220_v40 }
0x20f0   : > { %v4229_v42 = vadd.f32 1e-06, %v4221_v41 }
0x20f2   : > { %5602 = vrsqrt.f32 %v4229_v42 }
0x20fc   : > { %v5603_v45 = vpop.eup %5602 }
0x20fd   : > { %v4231_v47 = vmul.f32 %v5603_v45, %v4228_v44 }
0x20ff   : > { %v4238_v48 = vadd.f32 %v4949_v46, %v4231_v47 }
0x2101   : > { %v4239_v49 = vpack.c.bf16 %v4238_v48, %v4238_v48 }
0x2103   : > { %5426 = vmatmul.mubr.msk.bf16.vlgmr.msra.gmra.mrb[84].mxu1 %vm918_vm1, %v4239_v49 }
0x21d6   : > { %v4300_v53 = vpop.f32.mrb[84].mxu1 }
0x21d7   : > { %v4301_v54 = vadd.f32 %v4950_v52, %v4300_v53  ;;  %v5427_v55 = vpop.f32.mrb[85].mxu1 }
0x21d8   : > { %v4303_v56 = vpop.f32.mrb[86].mxu1 }
0x21d9   : > { %v4306_v57 = vmax.f32 %v4301_v54, 0.0  ;;  %v5428_v59 = vpop.f32.mrb[87].mxu1 }
0x21db   : > { %v4307_v61 = vpack.c.bf16 %v4306_v57, %v4306_v57 }
0x21dd   : > { %5438 = vmatmul.mubr.msk.bf16.vlgmr.msra.gmra.mrb[80].mxu0 %vm4347_vm6, %v4307_v61 }
0x22af   : > { %4396 = sbr.rel (%p4960_p1) target bundleno = 9197 (0x23ed), region = 108 }
0x22b0   : > { %v4385_v23 = vpop.f32.mrb[80].mxu0 }
0x22b1   : > { %v4386_v62 = vadd.f32 %v4954_v10, %v4385_v23  ;;  %v5439_v63 = vpop.f32.mrb[81].mxu0 }
0x22b2   : > { %v4388_v0 = vpop.f32.mrb[82].mxu0 }
0x22b3   : > { %v4391_v1 = vadd.f32 %v4386_v62, %v4209_v30  ;;  %v5440_v2 = vpop.f32.mrb[83].mxu0 }
0x22b5   : > { %4392 = vst.msk [vmem:[#allocation2] sm:$0xff] %vm918_vm1, %v4391_v1  ;;  %v4399_v3 = vsel (!%p4960_p1), %vm918_vm1, %v4391_v1, 0.0 }
0x22b6   : > { %4400 = vadd.xlane.f32.xlu0 %v4399_v3 }
0x2343   : > { %v4401_v4 = vpop.xlane.xlu0 %4400 }
0x2344   : > { %v4402_v5 = vmul.f32 0.03125, %v4401_v4 }
0x2346   : > { %v4403_v6 = vsub.f32 %v4391_v1, %v4402_v5 }
0x2348   : > { %v4404_v60 = vmul.f32 %v4403_v6, %v4403_v6  ;;  %v4415_v13 = vmul.f32 %v4961_v12, %v4403_v6 }
0x234a   : > { %v4405_v7 = vsel %vm918_vm1, %v4404_v60, 0.0 }
0x234b   : > { %4406 = vadd.xlane.f32.xlu0 %v4405_v7 }
0x23d8   : > { %v4407_v8 = vpop.xlane.xlu0 %4406 }
0x23d9   : > { %v4408_v9 = vmul.f32 0.03125, %v4407_v8 }
0x23db   : > { %v4416_v11 = vadd.f32 1e-06, %v4408_v9 }
0x23dd   : > { %5606 = vrsqrt.f32 %v4416_v11 }
0x23e7   : > { %v5607_v14 = vpop.eup %5606 }
0x23e8   : > { %v4418_v16 = vmul.f32 %v5607_v14, %v4415_v13 }
0x23ea   : > { %v4425_v17 = vadd.f32 %v4962_v15, %v4418_v16 }
0x23ec   : > { %4426 = vst.msk [vmem:[%s838_s16] sm:$0xff] %vm918_vm1, %v4425_v17 }
0x23ed PF: > { %s6583_s2 = sld [smem:[#allocation10_spill]]  ;;  %s6584_s0 = sld [smem:[#allocation7_spill]] }
0x23ee   : > { %s6586_s28 = sld [smem:[#allocation37_spill]]  ;;  %s4441_s23 = sshll.u32 %s838_s16, 4  ;;  %s4442_s23 = int_to_ptr.vmem [resolvable:$true] %s4441_s23 }
0x23ef   : > { %s5608_s20 = scalar_lea.vmem %s4442_s23, 128  ;;  %s5706_s4 = smov [#allocation3]  }
0x23f0   : > { %p5609_p2 = scmp.ne.s32.totalorder %s4442_s23, %s5608_s20  ;;  %s5612_s30 = sshll.u32 %s5706_s4, 4  ;;  %s5613_s30 = int_to_ptr.vmem [resolvable:$false] %s5612_s30 }
0x23f1   : > { %s5614_s18 = scalar_lea.vmem %s5613_s30, 256  ;;  %p5615_p6 = scmp.lt.s32.totalorder %s4442_s23, %s5613_s30 }
0x23f2   : > { %p5610_p4 = pnand %p5609_p2, %p5861_p3  ;;  %p5616_p7 = scmp.lt.s32.totalorder %s5614_s18, %s5608_s20 }
0x23f3   : > { %s4964_s21 = sshll.u32 %s6583_s2, 7  ;;  %s6587_s17 = sand.u32 1, %s6584_s0  }
0x23f4   : > { %s6431_s8 = scalar_lea.hbm %s6586_s28, %s4964_s21  ;;  %s4428_s10 = scalar_lea.sflag [#allocation4], %s6587_s17 }
0x23f5   : > { %p5611_p5 = pneg %p5610_p4  ;;  %p5617_p8 = por %p5616_p7, %p5615_p6 }
0x23f7   : > { %p5618_p10 = pnand %p5617_p8, %p5611_p5 }
0x23f9   : > { %5621 = shalt.err (!%p5618_p10)
}
0x23fa   : > { %s5622_s25 = scalar_lea.hbm %s6431_s8, 128  ;;  %s5626_s29 = scalar_lea.hbm %s6586_s28, 256 }
0x23fb   : > { %p5623_p11 = scmp.ne.s32.totalorder %s6431_s8, %s5622_s25  ;;  %p5627_p0 = scmp.lt.u32.totalorder %s6431_s8, %s6586_s28 }
0x23fc   : > { %p5628_p1 = scmp.lt.u32.totalorder %s5626_s29, %s5622_s25  ;;  %p5630_p4 = scmp.lt.u32.totalorder %s5622_s25, %s6431_s8 }
0x23fd   : > { %p5624_p12 = pnand %p5623_p11, %p5861_p3 }
0x23fe   : > { %p5629_p2 = por %p5628_p1, %p5627_p0 }
0x23ff   : > { %p5625_p13 = pneg %p5624_p12 }
0x2400   : > { %p5631_p5 = por %p5630_p4, %p5629_p2 }
0x2402   : > { %p5632_p6 = pnand %p5631_p5, %p5625_p13 }
0x2404   : > { %5635 = shalt.err (!%p5632_p6)
}
0x2405   : > { %5441 = dma.vmem_to_hbm [thread:$0]  (%p5861_p3), %s4442_s23, 128, %s6431_s8, %s4428_s10  }
0x2406 PF: > { %s6588_s11 = sld [smem:[#allocation13_spill]]  ;;  %s6589_s12 = sld [smem:[#allocation6_spill]] }
0x240c   : > { %p5447_p7 = scmp.ge.s32.totalorder %s6588_s11, 2  ;;  %s4453_s5 = sand.u32 1, %s6589_s12  }
0x240d   : > { %s4454_s26 = scalar_lea.sflag [#allocation4], %s4453_s5 }
0x240e   : > { %p5444_p8 = pnand %p5447_p7, %p5871_p9 }
0x2410   : > { %5669 = dma.done.wait (!%p5444_p8), %s4454_s26, 128  }
0x2411   : > { %5671 = vsyncadd (!%p5444_p8), %s4454_s26, 4294967168  ;;  %s33_s26 = sadd.s32 1, %s6588_s11   ;;  %s6591_s1 = sld [smem:[#allocation7_spill]] }
0x2412   : > { %p30_p10 = scmp.ge.s32.totalorder %s33_s26, 6   ;;  %s6592_s22 = sld [smem:[#allocation8_spill]] }
0x2413   : > { %s6593_s23 = sld [smem:[#allocation18_spill]]  ;;  %s6594_s24 = sld [smem:[#allocation11_spill]] }
0x2414   : > { %s6595_s2 = sld [smem:[#allocation12_spill]]  ;;  %s6596_s25 = sld [smem:[#allocation14_spill]] }
0x2415   : > { %s6597_s3 = sld [smem:[#allocation16_spill]]  ;;  %32 = sbr.rel (!%p30_p10) target bundleno = 24 (0x18), region = 240 }
0x241c   :  { %4459 = vsyncpa [#allocation4], 1 }
0x241d   :  { %4461 = vsyncpa [#allocation4 + $0x1], 1 }

</bundles_post_ra>
